<compile_context>
chip_gen: v7x
topology: tpu7x:2x2x1
jax: 0.10.0
libtpu: 0.0.40
codegen_flags: <defaults>
</compile_context>

<pallas_src>
import numpy as np
import jax
import jax.numpy as jnp
from jax.experimental import pallas as pl
from jax.experimental.pallas import tpu as pltpu

# ----------------------------- static config --------------------------------
NUM_ENT   = 32
NUM_REL   = 10
ENT_DIM   = 48          # E
TIME_DIM  = 16          # T
STATE_DIM = 32          # H
N_TIME    = 64          # absolute-time embedding table size
DATASET   = "ICEWS05-15"

EPAD  = NUM_ENT
NO_OP = NUM_REL * 2 + 2
E, T, H = ENT_DIM, TIME_DIM, STATE_DIM
ET = E - T              # static part of the dynamic entity embedding
FC_IN = 2 * E + H       # score_weighted_fc_ll input dim (= 128)
TIME_DECAY_RATE = 0.001


# ----------------------------- fused Pallas kernel ---------------------------
def make_fused_kernel(B, R, D):
    """Fused Low_level_Agent forward for fixed (B, R, D); assumes B == R."""
    RD = R * D

    def fused_kernel(e_ref, dt_ref, abst_ref, w_ref, b_ref, g_ref,
                     qe_ref, lstm_w_ref, lstm_b_ref, mask_ref,
                     fcwn_ref, fcwa_ref, fcb_ref, hx0_ref, cx0_ref,
                     dyn_ref, misc_ref):
        # ---- DynamicEmbedding for the packed row set [cur | neigh | qdst] ----
        t = jnp.cos(w_ref[...] * dt_ref[...] + b_ref[...])           # (N, T)
        g = g_ref[...]                                               # (1, T) = sigmoid(t_w)
        mix = (1.0 - g) * t + g * abst_ref[...]                      # (N, T)
        dyn = jnp.concatenate([e_ref[...], mix], axis=-1)            # (N, E)
        dyn_ref[...] = dyn                                           # one full-block store

        cur   = dyn[:B]                                              # (B, E)
        neigh = dyn[B:B + RD]                                        # (R*D, E)
        qdst  = dyn[B + RD:]                                         # (R, E)

        # ---- HistoryEncoder_LL: LSTMCell, one fused matmul + NO_OP mask ----
        hx = hx0_ref[...]
        cx = cx0_ref[...]
        xh = jnp.concatenate([cur, hx], axis=-1)                     # (B, E+H)
        gates = (jnp.dot(xh, lstm_w_ref[...],
                         preferred_element_type=jnp.float32) + lstm_b_ref[...])
        i = jax.nn.sigmoid(gates[:, 0 * H:1 * H])
        f = jax.nn.sigmoid(gates[:, 1 * H:2 * H])
        gg = jnp.tanh(gates[:, 2 * H:3 * H])
        o = jax.nn.sigmoid(gates[:, 3 * H:4 * H])
        cx_new = f * cx + i * gg
        hx_new = o * jnp.tanh(cx_new)
        keep = mask_ref[...] != 0                                    # True == NO_OP
        hx_out = jnp.where(keep, hx, hx_new)
        cx_out = jnp.where(keep, cx, cx_new)

        agent = jnp.concatenate([hx_out, qe_ref[...]], axis=-1)      # (B, H+E)

        # ---- neighbor scoring ----
        neigh3 = neigh.reshape(R, D, E)                              # sublane-split only
        qscore = jnp.sum(neigh3 * qdst[:, None, :], axis=-1)         # (R, D)
        m = jnp.max(qscore, axis=-1, keepdims=True)
        p = jnp.exp(qscore - m)
        qsoft = p / jnp.sum(p, axis=-1, keepdims=True)

        # sigmoid(W @ cat(neigh, agent) + b); W split since the agent part is
        # constant across dst (mathematically identical to the concat form).
        lin_n = jnp.sum(neigh3 * fcwn_ref[...][None, :, :], axis=-1)           # (R, D)
        lin_a = jnp.sum(agent * fcwa_ref[...], axis=-1, keepdims=True)         # (R, 1)
        b_gate = jax.nn.sigmoid(lin_n + lin_a + fcb_ref[...])                  # (R, D)

        # ---- one lane-dense store of every small per-row output ----
        misc_ref[...] = jnp.concatenate([agent, cx_out, qsoft, b_gate], axis=-1)

    return fused_kernel


# ----------------------------- wrapper ---------------------------------------
def low_level_agent_forward(params, current_entities, current_timestamps,
                            prev_relations, query_entity_embds,
                            query_timestamps, sample_rel, ll_space, query_dst):
    del sample_rel  # unused by the torch forward as well
    B = current_entities.shape[0]
    R, D, _ = ll_space.shape
    assert B == R, "demo assumes batch == rel_num (no repeat path needed)"
    RD = R * D
    N = B + RD + R

    # --- XLA glue: index packing, embedding-table gathers, trivial int math ---
    neigh_ent  = ll_space[:, :, 0].reshape(-1)
    neigh_abst = ll_space[:, :, 1].reshape(-1)
    neigh_dt   = query_timestamps[:, None] - ll_space[:, :, 1]            # (R, D)

    ent_idx  = jnp.concatenate([current_entities, neigh_ent, query_dst])
    abst_idx = jnp.concatenate([current_timestamps, neigh_abst, query_timestamps])
    dt_all   = jnp.concatenate([query_timestamps - current_timestamps,
                                neigh_dt.reshape(-1),
                                jnp.zeros_like(query_timestamps)])

    e_all    = params["ent_embs"][ent_idx]                                # (N, ET) gather
    abst_all = params["abst_embs"][abst_idx]                              # (N, T) gather
    dt_f     = dt_all.reshape(N, 1).astype(jnp.float32)

    g_tw  = jax.nn.sigmoid(params["t_w"]).reshape(1, T)                   # once per call
    mask  = jnp.broadcast_to((prev_relations == NO_OP)[:, None],
                             (B, H)).astype(jnp.int32)
    hx0   = jnp.zeros((B, H), jnp.float32)
    cx0   = jnp.zeros((B, H), jnp.float32)
    fc_wn = params["fc_w"][:, :E]                                         # (1, E)
    fc_wa = params["fc_w"][:, E:]                                         # (1, H+E)

    vmem = pl.BlockSpec(memory_space=pltpu.MemorySpace.VMEM)
    misc_w = (H + E) + H + D + D                                          # 128 here
    dyn_out, misc = pl.pallas_call(
        make_fused_kernel(B, R, D),
        out_shape=(jax.ShapeDtypeStruct((N, E), jnp.float32),
                   jax.ShapeDtypeStruct((B, misc_w), jnp.float32)),
        in_specs=[vmem] * 15,
        out_specs=(vmem, vmem),
    )(e_all, dt_f, abst_all,
      params["w"].reshape(1, T), params["b"].reshape(1, T), g_tw,
      query_entity_embds, params["lstm_w"], params["lstm_bias"], mask,
      fc_wn, fc_wa, params["fc_b"], hx0, cx0)

    cur_emb   = dyn_out[:B]
    neigh_emb = dyn_out[B:B + RD].reshape(R, D, E)
    pad_mask  = ll_space[:, :, 0] == EPAD
    hx          = misc[:, :H]
    agent_state = misc[:, :H + E]
    cx          = misc[:, H + E:H + E + H]
    qsoft       = misc[:, H + E + H:H + E + H + D]
    b_gate      = misc[:, H + E + H + D:H + E + H + 2 * D]
    time_decay  = TIME_DECAY_RATE * neigh_dt.astype(jnp.float32)

    # torch forward returns None and stashes state; we return that state.
    return dict(current_ent_embds=cur_emb, pad_mask_ll=pad_mask,
                neighbors_entities=neigh_emb, query_dst_score=qsoft,
                lstm_hx=hx, lstm_cx=cx,
                transit_low_agent_state=agent_state,
                b=b_gate, time_decay=time_decay)


# ----------------------------- parameters ------------------------------------
def init_params(key):
    ks = jax.random.split(key, 7)
    ent_table  = 0.1 * jax.random.normal(ks[0], (NUM_ENT + 1, ET), jnp.float32)
    abst_table = 0.1 * jax.random.normal(ks[1], (N_TIME, T), jnp.float32)
    w   = jnp.asarray(1.0 / 10.0 ** np.linspace(0, 9, T), jnp.float32)
    b   = jnp.zeros((T,), jnp.float32)
    t_w = -jnp.ones((T,), jnp.float32)
    k = 1.0 / np.sqrt(H)
    w_ih = jax.random.uniform(ks[2], (4 * H, E), jnp.float32, -k, k)
    w_hh = jax.random.uniform(ks[3], (4 * H, H), jnp.float32, -k, k)
    b_ih = jax.random.uniform(ks[4], (4 * H,), jnp.float32, -k, k)
    b_hh = jax.random.uniform(ks[5], (4 * H,), jnp.float32, -k, k)
    fc_w = 0.1 * jax.random.normal(ks[6], (1, FC_IN), jnp.float32)
    fc_b = jnp.zeros((1, 1), jnp.float32)
    # stacked LSTMCell weight: one (E+H, 4H) matmul per step (i,f,g,o order)
    lstm_w = jnp.concatenate([w_ih.T, w_hh.T], axis=0)
    return dict(ent_embs=ent_table, abst_embs=abst_table, w=w, b=b, t_w=t_w,
                lstm_w=lstm_w, lstm_bias=(b_ih + b_hh).reshape(1, 4 * H),
                fc_w=fc_w, fc_b=fc_b)


# ----------------------------- pure-JAX reference ----------------------------
def reference_forward(params, current_entities, current_timestamps,
                      prev_relations, query_entity_embds, query_timestamps,
                      sample_rel, ll_space, query_dst):
    def dyn(entities, dt, abst):
        e = params["ent_embs"][entities]
        t = jnp.cos(params["w"] * dt[..., None].astype(jnp.float32) + params["b"])
        g = jax.nn.sigmoid(params["t_w"])
        mix = (1.0 - g) * t + g * params["abst_embs"][abst]
        return jnp.concatenate([e, mix], axis=-1)

    B = current_entities.shape[0]
    R, D, _ = ll_space.shape
    cur = dyn(current_entities, query_timestamps - current_timestamps,
              current_timestamps)
    pad_mask = ll_space[:, :, 0] == EPAD
    ndt = query_timestamps[:, None] - ll_space[:, :, 1]
    neigh = dyn(ll_space[:, :, 0], ndt, ll_space[:, :, 1])
    qdst = dyn(query_dst, jnp.zeros_like(query_timestamps), query_timestamps)
    qsoft = jax.nn.softmax(jnp.sum(neigh * qdst[:, None, :], -1), axis=-1)
    xh = jnp.concatenate([cur, jnp.zeros((B, H), jnp.float32)], axis=-1)
    gates = xh @ params["lstm_w"] + params["lstm_bias"]
    i = jax.nn.sigmoid(gates[:, :H]); f = jax.nn.sigmoid(gates[:, H:2 * H])
    g = jnp.tanh(gates[:, 2 * H:3 * H]); o = jax.nn.sigmoid(gates[:, 3 * H:])
    cx_new = f * 0.0 + i * g
    hx_new = o * jnp.tanh(cx_new)
    no_op = (prev_relations == NO_OP)[:, None]
    hx = jnp.where(no_op, 0.0, hx_new)
    cx = jnp.where(no_op, 0.0, cx_new)
    agent = jnp.concatenate([hx, query_entity_embds], axis=-1)
    agent_b = jnp.broadcast_to(agent[:, None, :], (R, D, H + E))
    feat = jnp.concatenate([neigh, agent_b], axis=-1)
    b_gate = jax.nn.sigmoid(jnp.sum(feat * params["fc_w"][0], -1)
                            + params["fc_b"][0, 0])
    decay = TIME_DECAY_RATE * ndt.astype(jnp.float32)
    return dict(current_ent_embds=cur, pad_mask_ll=pad_mask,
                neighbors_entities=neigh, query_dst_score=qsoft,
                lstm_hx=hx, lstm_cx=cx, transit_low_agent_state=agent,
                b=b_gate, time_decay=decay)


# ----------------------------- demo / test ------------------------------------
if __name__ == "__main__":
    root = jax.random.PRNGKey(0)
    k_param, k_in = jax.random.split(root)
    params = init_params(k_param)

    B = R = 8
    D = 8
    ki = jax.random.split(k_in, 8)
    current_entities = jax.random.randint(ki[0], (B,), 0, NUM_ENT, dtype=jnp.int32)
    current_timestamps = jax.random.randint(ki[1], (B,), 0, N_TIME // 2, dtype=jnp.int32)
    query_timestamps = current_timestamps + jax.random.randint(
        ki[2], (B,), 0, N_TIME // 2, dtype=jnp.int32)
    prev_relations = jax.random.randint(ki[3], (B,), 0, 2 * NUM_REL + 3, dtype=jnp.int32)
    prev_relations = prev_relations.at[0].set(NO_OP)   # exercise NO_OP masking
    query_entity_embds = jax.random.normal(ki[4], (B, E), jnp.float32)
    query_dst = jax.random.randint(ki[5], (B,), 0, NUM_ENT, dtype=jnp.int32)
    ll_ent = jax.random.randint(ki[6], (R, D), 0, NUM_ENT + 1, dtype=jnp.int32)  # may hit ePAD
    ll_t = jax.random.randint(ki[7], (R, D), 0, N_TIME, dtype=jnp.int32)
    ll_space = jnp.stack([ll_ent, ll_t], axis=-1)
    sample_rel = jnp.arange(R, dtype=jnp.int32)        # unused in forward

    out = jax.jit(low_level_agent_forward)(
        params, current_entities, current_timestamps, prev_relations,
        query_entity_embds, query_timestamps, sample_rel, ll_space, query_dst)
    out = jax.block_until_ready(out)

    ref = reference_forward(
        params, current_entities, current_timestamps, prev_relations,
        query_entity_embds, query_timestamps, sample_rel, ll_space, query_dst)

    tols = {"current_ent_embds": 1e-5, "neighbors_entities": 1e-5,
            "query_dst_score": 1e-4, "time_decay": 1e-5,
            "lstm_hx": 2e-2, "lstm_cx": 2e-2,
            "transit_low_agent_state": 2e-2, "b": 2e-2}
    for name, tol in tols.items():
        np.testing.assert_allclose(np.asarray(out[name]), np.asarray(ref[name]),
                                   rtol=tol, atol=tol, err_msg=name)
    assert bool(jnp.array_equal(out["pad_mask_ll"], ref["pad_mask_ll"]))

    print("KERNEL_OK")
</pallas_src>

<mosaic_0001>
module attributes {stable_mosaic.version = 11 : i64} {
  func.func @fused_kernel(%arg0: memref<80x32xf32, #tpu.memory_space<vmem>>, %arg1: memref<80x1xf32, #tpu.memory_space<vmem>>, %arg2: memref<80x16xf32, #tpu.memory_space<vmem>>, %arg3: memref<1x16xf32, #tpu.memory_space<vmem>>, %arg4: memref<1x16xf32, #tpu.memory_space<vmem>>, %arg5: memref<1x16xf32, #tpu.memory_space<vmem>>, %arg6: memref<8x48xf32, #tpu.memory_space<vmem>>, %arg7: memref<80x128xf32, #tpu.memory_space<vmem>>, %arg8: memref<1x128xf32, #tpu.memory_space<vmem>>, %arg9: memref<8x32xi32, #tpu.memory_space<vmem>>, %arg10: memref<1x48xf32, #tpu.memory_space<vmem>>, %arg11: memref<1x80xf32, #tpu.memory_space<vmem>>, %arg12: memref<1x1xf32, #tpu.memory_space<vmem>>, %arg13: memref<8x32xf32, #tpu.memory_space<vmem>>, %arg14: memref<8x32xf32, #tpu.memory_space<vmem>>, %arg15: memref<80x48xf32, #tpu.memory_space<vmem>>, %arg16: memref<8x128xf32, #tpu.memory_space<vmem>>) attributes {dimension_semantics = [], scalar_prefetch = 0 : i64, scratch_operands = 0 : i64, tpu.core_type = #tpu.core_type<tc>} {
    %c0 = arith.constant 0 : index
    %c0_0 = arith.constant 0 : index
    %0 = vector.load %arg3[%c0, %c0_0] : memref<1x16xf32, #tpu.memory_space<vmem>>, vector<1x16xf32>
    %c0_1 = arith.constant 0 : index
    %c0_2 = arith.constant 0 : index
    %1 = vector.load %arg1[%c0_1, %c0_2] : memref<80x1xf32, #tpu.memory_space<vmem>>, vector<80x1xf32>
    %2 = vector.broadcast %0 : vector<1x16xf32> to vector<80x16xf32>
    %3 = vector.broadcast %1 : vector<80x1xf32> to vector<80x16xf32>
    %4 = arith.mulf %2, %3 : vector<80x16xf32>
    %c0_3 = arith.constant 0 : index
    %c0_4 = arith.constant 0 : index
    %5 = vector.load %arg4[%c0_3, %c0_4] : memref<1x16xf32, #tpu.memory_space<vmem>>, vector<1x16xf32>
    %6 = vector.broadcast %5 : vector<1x16xf32> to vector<80x16xf32>
    %7 = arith.addf %4, %6 : vector<80x16xf32>
    %8 = math.cos %7 : vector<80x16xf32>
    %c0_5 = arith.constant 0 : index
    %c0_6 = arith.constant 0 : index
    %9 = vector.load %arg5[%c0_5, %c0_6] : memref<1x16xf32, #tpu.memory_space<vmem>>, vector<1x16xf32>
    %cst = arith.constant 1.000000e+00 : f32
    %10 = vector.broadcast %cst : f32 to vector<1x16xf32>
    %11 = arith.subf %10, %9 : vector<1x16xf32>
    %12 = vector.broadcast %11 : vector<1x16xf32> to vector<80x16xf32>
    %13 = arith.mulf %12, %8 : vector<80x16xf32>
    %c0_7 = arith.constant 0 : index
    %c0_8 = arith.constant 0 : index
    %14 = vector.load %arg2[%c0_7, %c0_8] : memref<80x16xf32, #tpu.memory_space<vmem>>, vector<80x16xf32>
    %15 = vector.broadcast %9 : vector<1x16xf32> to vector<80x16xf32>
    %16 = arith.mulf %15, %14 : vector<80x16xf32>
    %17 = arith.addf %13, %16 : vector<80x16xf32>
    %c0_9 = arith.constant 0 : index
    %c0_10 = arith.constant 0 : index
    %18 = vector.load %arg0[%c0_9, %c0_10] : memref<80x32xf32, #tpu.memory_space<vmem>>, vector<80x32xf32>
    %19 = tpu.concatenate %18, %17 in 1 : vector<80x32xf32>, vector<80x16xf32> -> vector<80x48xf32>
    %c0_11 = arith.constant 0 : index
    %c0_12 = arith.constant 0 : index
    %20 = vector.load %arg15[%c0_11, %c0_12] : memref<80x48xf32, #tpu.memory_space<vmem>>, vector<80x48xf32>
    tpu.vector_store %arg15[%c0_11, %c0_12], %19 {strides = array<i32>} : memref<80x48xf32, #tpu.memory_space<vmem>>, vector<80x48xf32>,
    %21 = vector.extract_strided_slice %19 {offsets = [0, 0], sizes = [8, 48], strides = [1, 1]} : vector<80x48xf32> to vector<8x48xf32>
    %22 = vector.extract_strided_slice %19 {offsets = [8, 0], sizes = [64, 48], strides = [1, 1]} : vector<80x48xf32> to vector<64x48xf32>
    %23 = vector.extract_strided_slice %19 {offsets = [72, 0], sizes = [8, 48], strides = [1, 1]} : vector<80x48xf32> to vector<8x48xf32>
    %c0_13 = arith.constant 0 : index
    %c0_14 = arith.constant 0 : index
    %24 = vector.load %arg13[%c0_13, %c0_14] : memref<8x32xf32, #tpu.memory_space<vmem>>, vector<8x32xf32>
    %c0_15 = arith.constant 0 : index
    %c0_16 = arith.constant 0 : index
    %25 = vector.load %arg14[%c0_15, %c0_16] : memref<8x32xf32, #tpu.memory_space<vmem>>, vector<8x32xf32>
    %26 = tpu.concatenate %21, %24 in 1 : vector<8x48xf32>, vector<8x32xf32> -> vector<8x80xf32>
    %c0_17 = arith.constant 0 : index
    %c0_18 = arith.constant 0 : index
    %27 = vector.load %arg7[%c0_17, %c0_18] : memref<80x128xf32, #tpu.memory_space<vmem>>, vector<80x128xf32>
    %cst_19 = arith.constant dense<0.000000e+00> : vector<8x128xf32>
    %28 = tpu.matmul %26, %27, %cst_19 {dimension_numbers = #tpu.dot_dimension_numbers<[1], [0], [0], [1], [0, 0, 1, 1], [], []>} : vector<8x80xf32>, vector<80x128xf32>, vector<8x128xf32> -> vector<8x128xf32>
    %c0_20 = arith.constant 0 : index
    %c0_21 = arith.constant 0 : index
    %29 = vector.load %arg8[%c0_20, %c0_21] : memref<1x128xf32, #tpu.memory_space<vmem>>, vector<1x128xf32>
    %30 = vector.broadcast %29 : vector<1x128xf32> to vector<8x128xf32>
    %31 = arith.addf %28, %30 : vector<8x128xf32>
    %32 = vector.extract_strided_slice %31 {offsets = [0, 0], sizes = [8, 32], strides = [1, 1]} : vector<8x128xf32> to vector<8x32xf32>
    %33 = arith.negf %32 : vector<8x32xf32>
    %34 = math.exp %33 : vector<8x32xf32>
    %cst_22 = arith.constant 1.000000e+00 : f32
    %35 = vector.broadcast %cst_22 : f32 to vector<8x32xf32>
    %36 = arith.addf %35, %34 : vector<8x32xf32>
    %37 = arith.divf %35, %36 : vector<8x32xf32>
    %38 = vector.extract_strided_slice %31 {offsets = [0, 32], sizes = [8, 32], strides = [1, 1]} : vector<8x128xf32> to vector<8x32xf32>
    %39 = arith.negf %38 : vector<8x32xf32>
    %40 = math.exp %39 : vector<8x32xf32>
    %cst_23 = arith.constant 1.000000e+00 : f32
    %41 = vector.broadcast %cst_23 : f32 to vector<8x32xf32>
    %42 = arith.addf %41, %40 : vector<8x32xf32>
    %43 = arith.divf %41, %42 : vector<8x32xf32>
    %44 = vector.extract_strided_slice %31 {offsets = [0, 64], sizes = [8, 32], strides = [1, 1]} : vector<8x128xf32> to vector<8x32xf32>
    %45 = math.tanh %44 : vector<8x32xf32>
    %46 = vector.extract_strided_slice %31 {offsets = [0, 96], sizes = [8, 32], strides = [1, 1]} : vector<8x128xf32> to vector<8x32xf32>
    %47 = arith.negf %46 : vector<8x32xf32>
    %48 = math.exp %47 : vector<8x32xf32>
    %cst_24 = arith.constant 1.000000e+00 : f32
    %49 = vector.broadcast %cst_24 : f32 to vector<8x32xf32>
    %50 = arith.addf %49, %48 : vector<8x32xf32>
    %51 = arith.divf %49, %50 : vector<8x32xf32>
    %52 = arith.mulf %43, %25 : vector<8x32xf32>
    %53 = arith.mulf %37, %45 : vector<8x32xf32>
    %54 = arith.addf %52, %53 : vector<8x32xf32>
    %55 = math.tanh %54 : vector<8x32xf32>
    %56 = arith.mulf %51, %55 : vector<8x32xf32>
    %c0_25 = arith.constant 0 : index
    %c0_26 = arith.constant 0 : index
    %57 = vector.load %arg9[%c0_25, %c0_26] : memref<8x32xi32, #tpu.memory_space<vmem>>, vector<8x32xi32>
    %c0_i32 = arith.constant 0 : i32
    %58 = vector.broadcast %c0_i32 : i32 to vector<8x32xi32>
    %59 = arith.cmpi ne, %57, %58 : vector<8x32xi32>
    %60 = arith.select %59, %24, %56 : vector<8x32xi1>, vector<8x32xf32>
    %61 = arith.select %59, %25, %54 : vector<8x32xi1>, vector<8x32xf32>
    %c0_27 = arith.constant 0 : index
    %c0_28 = arith.constant 0 : index
    %62 = vector.load %arg6[%c0_27, %c0_28] : memref<8x48xf32, #tpu.memory_space<vmem>>, vector<8x48xf32>
    %63 = tpu.concatenate %60, %62 in 1 : vector<8x32xf32>, vector<8x48xf32> -> vector<8x80xf32>
    %64 = vector.shape_cast %22 : vector<64x48xf32> to vector<8x8x48xf32>
    %65 = vector.shape_cast %23 : vector<8x48xf32> to vector<8x1x48xf32>
    %66 = vector.broadcast %65 : vector<8x1x48xf32> to vector<8x8x48xf32>
    %67 = arith.mulf %64, %66 : vector<8x8x48xf32>
    %cst_29 = arith.constant dense<0.000000e+00> : vector<8x8xf32>
    %68 = vector.multi_reduction <add>, %67, %cst_29 [2] : vector<8x8x48xf32> to vector<8x8xf32>
    %cst_30 = arith.constant dense<0xFF800000> : vector<8xf32>
    %69 = vector.multi_reduction <maximumf>, %68, %cst_30 [1] : vector<8x8xf32> to vector<8xf32>
    %70 = vector.shape_cast %69 : vector<8xf32> to vector<8x1xf32>
    %71 = vector.broadcast %70 : vector<8x1xf32> to vector<8x8xf32>
    %72 = arith.subf %68, %71 : vector<8x8xf32>
    %73 = math.exp %72 : vector<8x8xf32>
    %cst_31 = arith.constant dense<0.000000e+00> : vector<8xf32>
    %74 = vector.multi_reduction <add>, %73, %cst_31 [1] : vector<8x8xf32> to vector<8xf32>
    %75 = vector.shape_cast %74 : vector<8xf32> to vector<8x1xf32>
    %76 = vector.broadcast %75 : vector<8x1xf32> to vector<8x8xf32>
    %77 = arith.divf %73, %76 : vector<8x8xf32>
    %c0_32 = arith.constant 0 : index
    %c0_33 = arith.constant 0 : index
    %78 = vector.load %arg10[%c0_32, %c0_33] : memref<1x48xf32, #tpu.memory_space<vmem>>, vector<1x48xf32>
    %79 = vector.shape_cast %78 : vector<1x48xf32> to vector<1x1x48xf32>
    %80 = vector.broadcast %79 : vector<1x1x48xf32> to vector<8x8x48xf32>
    %81 = arith.mulf %64, %80 : vector<8x8x48xf32>
    %cst_34 = arith.constant dense<0.000000e+00> : vector<8x8xf32>
    %82 = vector.multi_reduction <add>, %81, %cst_34 [2] : vector<8x8x48xf32> to vector<8x8xf32>
    %c0_35 = arith.constant 0 : index
    %c0_36 = arith.constant 0 : index
    %83 = vector.load %arg11[%c0_35, %c0_36] : memref<1x80xf32, #tpu.memory_space<vmem>>, vector<1x80xf32>
    %84 = vector.broadcast %83 : vector<1x80xf32> to vector<8x80xf32>
    %85 = arith.mulf %63, %84 : vector<8x80xf32>
    %cst_37 = arith.constant dense<0.000000e+00> : vector<8xf32>
    %86 = vector.multi_reduction <add>, %85, %cst_37 [1] : vector<8x80xf32> to vector<8xf32>
    %87 = vector.shape_cast %86 : vector<8xf32> to vector<8x1xf32>
    %88 = vector.broadcast %87 : vector<8x1xf32> to vector<8x8xf32>
    %89 = arith.addf %82, %88 : vector<8x8xf32>
    %c0_38 = arith.constant 0 : index
    %c0_39 = arith.constant 0 : index
    %90 = vector.load %arg12[%c0_38, %c0_39] : memref<1x1xf32, #tpu.memory_space<vmem>>, vector<1x1xf32>
    %91 = vector.broadcast %90 : vector<1x1xf32> to vector<8x8xf32>
    %92 = arith.addf %89, %91 : vector<8x8xf32>
    %93 = arith.negf %92 : vector<8x8xf32>
    %94 = math.exp %93 : vector<8x8xf32>
    %cst_40 = arith.constant 1.000000e+00 : f32
    %95 = vector.broadcast %cst_40 : f32 to vector<8x8xf32>
    %96 = arith.addf %95, %94 : vector<8x8xf32>
    %97 = arith.divf %95, %96 : vector<8x8xf32>
    %98 = tpu.concatenate %63, %61, %77, %97 in 1 : vector<8x80xf32>, vector<8x32xf32>, vector<8x8xf32>, vector<8x8xf32> -> vector<8x128xf32>
    %c0_41 = arith.constant 0 : index
    %c0_42 = arith.constant 0 : index
    %99 = vector.load %arg16[%c0_41, %c0_42] : memref<8x128xf32, #tpu.memory_space<vmem>>, vector<8x128xf32>
    tpu.vector_store %arg16[%c0_41, %c0_42], %98 {strides = array<i32>} : memref<8x128xf32, #tpu.memory_space<vmem>>, vector<8x128xf32>,
    return
  }
}

</mosaic_0001>

<bundles_post_ra>
// kernel: low_level_agent_forward.1
= control target key start
LH: loop header
LB: loop body
LE: loop exit
PB: predicated region body
PF: predicated region fallthrough
CT: control target
= control target key end

     0   :  { %v2435_v0 = vmov 0   ;;  %s2436_s26 = smov 48   ;;  %v2437_v23 = vmov 683565275   ;;  %v2438_v25 = vmov 2475754826   ;;  %s3859_s1 = inlined_call_operand.vmem [shape: f32[80,1], index: 1, kind: input, shape index: {}]   ;;  %s3860_s13 = inlined_call_operand.vmem [shape: f32[8,32], index: 13, kind: input, shape index: {}, may-alias: {13,14}]   ;;  %s3861_s3 = inlined_call_operand.vmem [shape: f32[1,16], index: 3, kind: input, shape index: {}]   ;;  %s3862_s4 = inlined_call_operand.vmem [shape: f32[1,16], index: 4, kind: input, shape index: {}]   ;;  %s3863_s5 = inlined_call_operand.vmem [shape: f32[1,16], index: 5, kind: input, shape index: {}]   ;;  %s3864_s2 = inlined_call_operand.vmem [shape: f32[80,16], index: 2, kind: input, shape index: {}]   ;;  %s3865_s7 = inlined_call_operand.vmem [shape: f32[80,128], index: 7, kind: input, shape index: {}]   ;;  %s3866_s0 = inlined_call_operand.vmem [shape: f32[80,32], index: 0, kind: input, shape index: {}]   ;;  %s3867_s15 = inlined_call_operand.vmem [shape: f32[80,48], index: 15, kind: output, shape index: {0}]   ;;  %s3868_s8 = inlined_call_operand.vmem [shape: f32[1,128], index: 8, kind: input, shape index: {}]   ;;  %s3869_s14 = inlined_call_operand.vmem [shape: f32[8,32], index: 14, kind: input, shape index: {}, may-alias: {13,14}]   ;;  %s3870_s6 = inlined_call_operand.vmem [shape: f32[8,48], index: 6, kind: input, shape index: {}]   ;;  %s3871_s12 = inlined_call_operand.<no memory space> [shape: f32[1,1], index: 12, kind: input, shape index: {}]   ;;  %s3872_s10 = inlined_call_operand.vmem [shape: f32[1,48], index: 10, kind: input, shape index: {}]   ;;  %s3873_s9 = inlined_call_operand.vmem [shape: s32[8,32], index: 9, kind: input, shape index: {}]   ;;  %s3874_s11 = inlined_call_operand.vmem [shape: f32[1,80], index: 11, kind: input, shape index: {}]   ;;  %s3875_s16 = inlined_call_operand.vmem [shape: f32[8,128], index: 16, kind: output, shape index: {1}]  }
   0x1   :  { %3877 = sst [smem:[#allocation3_spill]] %s3859_s1  ;;  %2318 = vset.pattern.permute.xlu0 %v2435_v0  ;;  %2319 = vset.pattern.permute.xlu1 %v2435_v0  ;;  %v1304_v2 = vld [vmem:[%s3860_s13] sm:$0xff]  ;;  %v2439_v28 = vmov 2131351028   ;;  %v2440_v31 = vmov 2102212464  }
   0x2   :  { %s3878_s23 = sld [smem:[#allocation3_spill]]  ;;  %1307 = vrot.lane.b32.xlu1 %v1304_v2, %s2436_s26  ;;  %v2560_v8 = vld [vmem:[%s3861_s3] ss:$0 sm:$0xff]  ;;  %v2441_v34 = vmov 920167782   ;;  %s2444_s24 = smov 32  }
   0x3   :  { %v2565_v9 = vld [vmem:[%s3862_s4] ss:$0 sm:$0xff]  ;;  %v2442_v37 = vmov 1326507024   ;;  %s2448_s28 = smov 64  }
   0x8   :  { %v55_v1 = vld [vmem:[%s3878_s23] sm:$0xff]  ;;  %v64_v3 = vld [vmem:[%s3878_s23 + $0x48] sm:$0xff]  ;;  %v57_v4 = vld [vmem:[%s3878_s23 + $0x10] sm:$0xff] }
   0x9   :  { %73 = vperm.xlu0 %2318, %v55_v1   ;;  %118 = vperm.xlu1 %2319, %v64_v3   ;;  %v59_v5 = vld [vmem:[%s3878_s23 + $0x20] sm:$0xff]  ;;  %v61_v6 = vld [vmem:[%s3878_s23 + $0x30] sm:$0xff] }
   0xa   :  { %v63_v7 = vld [vmem:[%s3878_s23 + $0x40] sm:$0xff] }
   0xd   :  { %83 = vperm.xlu1 %2319, %v57_v4   ;;  %v1181_v4 = vlaneseq }
  0x11   :  { %93 = vperm.xlu1 %2319, %v59_v5  }
  0x15   :  { %103 = vperm.xlu1 %2319, %v61_v6  }
  0x19   :  { %113 = vperm.xlu1 %2319, %v63_v7  }
  0x74   :  { %v2585_v43 = vpop.permute.xlu1 %1307 }
  0x88   :  { %v74_v10 = vpop.permute.xlu0 %73  ;;  %v119_v63 = vpop.permute.xlu1 %118 }
  0x89   :  { %v121_v11 = vmul.f32 %v2560_v8, %v74_v10  ;;  %v130_v0 = vmul.f32 %v2560_v8, %v119_v63 }
  0x8b   :  { %v2569_v12 = vadd.f32 %v2565_v9, %v121_v11  ;;  %v2596_v2 = vadd.f32 %v2565_v9, %v130_v0 }
  0x8c   :  { %v84_v5 = vpop.permute.xlu1 %83 }
  0x8d   :  { %v151_v13 = vand.u32 2139095040, %v2569_v12  ;;  %v148_v17 = vand.u32 2147483647, %v2569_v12  ;;  %v1075_v7 = vand.u32 2147483647, %v2596_v2  ;;  %v1078_v10 = vand.u32 2139095040, %v2596_v2 }
  0x8e   :  { %v123_v11 = vmul.f32 %v2560_v8, %v84_v5  ;;  %vm150_vm7 = vcmp.lt.s32.totalorder %v2569_v12, 0 }
  0x8f   :  { %v152_v14 = vshrl.u32 %v151_v13, 23  ;;  %v155_v20 = vand.u32 8388607, %v148_v17  ;;  %vm2662_vm9 = vcmp.le.f32.partialorder %v148_v17, 0.7853982 }
  0x91   :  { %v2159_v15 = vadd.s32 4294967169, %v152_v14  ;;  %v156_v39 = vor.u32 8388608, %v155_v20  ;;  %v94_v20 = vpop.permute.xlu1 %93 }
  0x93   :  { %v158_v16 = vadd.s32 1, %v2159_v15  ;;  %v196_v54 = vshll.u32 %v156_v39, 8  ;;  %v1079_v15 = vshrl.u32 %v1078_v10, 23 }
  0x95   :  { %vm159_vm0 = vcmp.gt.s32.totalorder %v158_v16, 0 }
  0x96   :  { %v160_v18 = vsel %vm159_vm0, %v158_v16, 0  ;;  %v2605_v16 = vshrl.u32 %v1181_v4, 7 }
  0x97   :  { %v162_v19 = vand.u32 31, %v160_v18  ;;  %v161_v22 = vshrl.u32 %v160_v18, 5  ;;  %v1082_v18 = vand.u32 8388607, %v1075_v7 }
  0x99   :  { %v163_v21 = vsub.s32 32, %v162_v19  ;;  %v165_v24 = vshll.u32 %v2437_v23, %v162_v19  ;;  %v168_v26 = vshll.u32 %v2438_v25, %v162_v19  ;;  %v171_v30 = vshll.u32 %v2439_v28, %v162_v19 }
  0x9a   :  { %v174_v33 = vshll.u32 %v2440_v31, %v162_v19  ;;  %v177_v36 = vshll.u32 %v2441_v34, %v162_v19  ;;  %vm180_vm1 = vcmp.lt.s32.totalorder %v161_v22, 1  ;;  %vm183_vm2 = vcmp.lt.s32.totalorder %v161_v22, 4 }
  0x9b   :  { %v166_v27 = vshrl.u32 %v2438_v25, %v163_v21  ;;  %v169_v29 = vshrl.u32 %v2439_v28, %v163_v21  ;;  %v172_v32 = vshrl.u32 %v2440_v31, %v163_v21  ;;  %v175_v35 = vshrl.u32 %v2441_v34, %v163_v21 }
  0x9c   :  { %v178_v38 = vshrl.u32 %v2442_v37, %v163_v21  ;;  %v164_v49 = vshrl.u32 %v2437_v23, %v163_v21  ;;  %vm182_vm3 = vcmp.lt.s32.totalorder %v161_v22, 3  ;;  %vm181_vm4 = vcmp.lt.s32.totalorder %v161_v22, 2 }
  0x9d   :  { %v167_v40 = vor.u32 %v166_v27, %v165_v24  ;;  %v170_v41 = vor.u32 %v169_v29, %v168_v26  ;;  %v173_v42 = vor.u32 %v172_v32, %v171_v30  ;;  %v176_v44 = vor.u32 %v175_v35, %v174_v33  ;;  %v2619_v29 = vld [vmem:[%s3863_s5] sm:$0x1] }
  0x9e   :  { %v179_v45 = vor.u32 %v178_v38, %v177_v36  ;;  %v2610_v19 = vadd.f32 %v2565_v9, %v123_v11  ;;  %v2195_v22 = vadd.s32 4294967169, %v1079_v15  ;;  %v125_v32 = vmul.f32 %v2560_v8, %v94_v20 }
  0x9f   :  { %v185_v46 = vsel %vm183_vm2, %v173_v42, 2102212464  ;;  %v188_v47 = vsel %vm180_vm1, %v167_v40, %v170_v41  ;;  %v192_v48 = vsel %vm180_vm1, %v170_v41, %v173_v42  ;;  %v189_v50 = vsel %vm183_vm2, %v176_v44, 920167782 }
  0xa0   :  { %v193_v51 = vsel %vm183_vm2, %v179_v45, 1326507024  ;;  %v190_v52 = vsel %vm182_vm3, %v173_v42, %v189_v50  ;;  %v184_v55 = vsel %vm180_vm1, %v164_v49, %v167_v40  ;;  %v186_v56 = vsel %vm182_vm3, %v170_v41, %v185_v46 }
  0xa1   :  { %v194_v53 = vsel %vm182_vm3, %v176_v44, %v193_v51  ;;  %v191_v57 = vsel %vm181_vm4, %v188_v47, %v190_v52  ;;  %v187_v1 = vsel %vm181_vm4, %v184_v55, %v186_v56  ;;  %v354_v24 = vand.u32 2147483647, %v2610_v19 }
  0xa2   :  { %v195_v58 = vsel %vm181_vm4, %v192_v48, %v194_v53  ;;  %v2591_v61 = vmul.u32.u64.low %v196_v54, %v191_v57  ;;  %v2592_v62 = vmul.u32.u64.high %v196_v54, %v191_v57, %v2591_v61  ;;  %v203_v6 = vmul.u32 %v196_v54, %v187_v1 }
  0xa3   :  { %v2588_v59 = vmul.u32.u64.low %v196_v54, %v195_v58  ;;  %v2589_v60 = vmul.u32.u64.high %v196_v54, %v195_v58, %v2588_v59  ;;  %v357_v26 = vand.u32 2139095040, %v2610_v19  ;;  %v1085_v30 = vadd.s32 1, %v2195_v22 }
  0xa4   :  { %v206_v3 = vadd.s32 1, %v2592_v62  ;;  %v2623_v33 = vsub.s32 0, %v2605_v16  ;;  %v1083_v35 = vor.u32 8388608, %v1082_v18  ;;  %v1179_v39 = vsub.f32 1.0, %v2619_v29 }
  0xa5   :  { %vm205_vm5 = vc.u32 %v2589_v60, %v2591_v61  ;;  %v358_v36 = vshrl.u32 %v357_v26, 23  ;;  %vm1086_vm6 = vcmp.gt.s32.totalorder %v1085_v30, 0  ;;  %v2629_v41 = vand.u32 8388607, %v354_v24 }
  0xa6   :  { %v207_v13 = vsel %vm205_vm5, %v206_v3, %v2592_v62  ;;  %v1087_v40 = vsel %vm1086_vm6, %v1085_v30, 0  ;;  %v2634_v46 = vadd.f32 %v2565_v9, %v125_v32  ;;  %v204_v47 = vadd.s32 %v2591_v61, %v2589_v60 }
  0xa7   :  { %v208_v14 = vadd.s32 %v207_v13, %v203_v6  ;;  %v1089_v44 = vand.u32 31, %v1087_v40  ;;  %v2167_v45 = vadd.s32 4294967169, %v358_v36  ;;  %v2640_v49 = vrot.slane %v2619_v29, %v2623_v33 }
  0xa8   :  { %v2642_v50 = vshll.u32 %v1083_v35, 8  ;;  %v1088_v52 = vshrl.u32 %v1087_v40, 5  ;;  %v560_v54 = vand.u32 2147483647, %v2634_v46  ;;  %v362_v58 = vor.u32 8388608, %v2629_v41 }
  0xa9   :  { %v209_v21 = vadd.s32 536870912, %v208_v14  ;;  %v1090_v53 = vsub.s32 32, %v1089_v44  ;;  %v1092_v55 = vshll.u32 %v2437_v23, %v1089_v44  ;;  %v1095_v56 = vshll.u32 %v2438_v25, %v1089_v44 }
  0xaa   :  { %v1098_v57 = vshll.u32 %v2439_v28, %v1089_v44  ;;  %v1101_v60 = vshll.u32 %v2440_v31, %v1089_v44  ;;  %v1104_v61 = vshll.u32 %v2441_v34, %v1089_v44  ;;  %v364_v62 = vadd.s32 1, %v2167_v45 }
  0xab   :  { %v2614_v27 = vshrl.u32 %v209_v21, 30  ;;  %v1091_v63 = vshrl.u32 %v2437_v23, %v1090_v53  ;;  %v1093_v0 = vshrl.u32 %v2438_v25, %v1090_v53  ;;  %v1096_v1 = vshrl.u32 %v2439_v28, %v1090_v53 }
  0xac   :  { %v1099_v3 = vshrl.u32 %v2440_v31, %v1090_v53  ;;  %v1102_v6 = vshrl.u32 %v2441_v34, %v1090_v53  ;;  %v1105_v10 = vshrl.u32 %v2442_v37, %v1090_v53  ;;  %vm1107_vm8 = vcmp.lt.s32.totalorder %v1088_v52, 1 }
  0xad   :  { %v211_v38 = vshll.u32 %v2614_v27, 30  ;;  %v234_v48 = vsub.s32 4, %v2614_v27  ;;  %v1094_v13 = vor.u32 %v1093_v0, %v1092_v55  ;;  %vm1108_vm10 = vcmp.lt.s32.totalorder %v1088_v52, 2 }
  0xae   :  { %v1100_v15 = vor.u32 %v1099_v3, %v1098_v57  ;;  %v1103_v20 = vor.u32 %v1102_v6, %v1101_v60  ;;  %v1106_v21 = vor.u32 %v1105_v10, %v1104_v61  ;;  %vm1109_vm11 = vcmp.lt.s32.totalorder %v1088_v52, 3 }
  0xaf   :  { %v2631_v42 = vsub.s32 %v208_v14, %v211_v38  ;;  %v1097_v14 = vor.u32 %v1096_v1, %v1095_v56  ;;  %vm1110_vm12 = vcmp.lt.s32.totalorder %v1088_v52, 4  ;;  %v1111_v22 = vsel %vm1107_vm8, %v1091_v63, %v1094_v13 }
  0xb0   :  { %v1112_v32 = vsel %vm1110_vm12, %v1100_v15, 2102212464  ;;  %v1116_v35 = vsel %vm1110_vm12, %v1103_v20, 920167782  ;;  %vm365_vm14 = vcmp.gt.s32.totalorder %v364_v62, 0  ;;  %vm240_vm6 = vweird.f32 %v2569_v12 }
  0xb1   :  { %v214_v51 = vsub.s32 0, %v2631_v42  ;;  %v1115_v26 = vsel %vm1107_vm8, %v1094_v13, %v1097_v14  ;;  %v1119_v30 = vsel %vm1107_vm8, %v1097_v14, %v1100_v15  ;;  %v1113_v36 = vsel %vm1109_vm11, %v1097_v14, %v1112_v32 }
  0xb2   :  { %v1117_v38 = vsel %vm1109_vm11, %v1100_v15, %v1116_v35  ;;  %v1120_v40 = vsel %vm1110_vm12, %v1106_v21, 1326507024  ;;  %v1114_v53 = vsel %vm1108_vm10, %v1111_v22, %v1113_v36  ;;  %v366_v57 = vsel %vm365_vm14, %v364_v62, 0 }
  0xb3   :  { %v2160_v59 = vmin.u32 %v214_v51, %v2631_v42  ;;  %v2672_v51 = vsel %vm150_vm7, %v234_v48, %v2614_v27  ;;  %v1118_v55 = vsel %vm1108_vm10, %v1115_v26, %v1117_v38  ;;  %v1121_v56 = vsel %vm1109_vm11, %v1103_v20, %v1120_v40 }
  0xb4   :  { %v1122_v61 = vsel %vm1108_vm10, %v1119_v30, %v1121_v56  ;;  %v2678_v63 = vshrl.u32 %v366_v57, 5  ;;  %v2685_v27 = vmul.u32.u64.low %v2642_v50, %v1118_v55  ;;  %v2686_v48 = vmul.u32.u64.high %v2642_v50, %v1118_v55, %v2685_v27 }
  0xb5   :  { %v216_v5 = vclz %v2160_v59  ;;  %v368_v62 = vand.u32 31, %v366_v57  ;;  %v1130_v52 = vmul.u32 %v2642_v50, %v1114_v53  ;;  %v563_v14 = vand.u32 2139095040, %v2634_v46 }
  0xb6   :  { %vm386_vm15 = vcmp.lt.s32.totalorder %v2678_v63, 1  ;;  %vm388_vm0 = vcmp.lt.s32.totalorder %v2678_v63, 3  ;;  %vm387_vm1 = vcmp.lt.s32.totalorder %v2678_v63, 2  ;;  %vm389_vm3 = vcmp.lt.s32.totalorder %v2678_v63, 4  ;;  %v1314_v63 = vld [vmem:[%s3865_s7 + $0x18] sm:$0xff] }
  0xb7   :  { %v2161_v18 = vadd.s32 4294967294, %v216_v5  ;;  %v2695_v5 = vshll.u32 %v362_v58, 8  ;;  %v369_v10 = vsub.s32 32, %v368_v62  ;;  %v371_v13 = vshll.u32 %v2437_v23, %v368_v62 }
  0xb8   :  { %v377_v30 = vshll.u32 %v2439_v28, %v368_v62  ;;  %v380_v35 = vshll.u32 %v2440_v31, %v368_v62 }
  0xb9   :  { %vm2162_vm13 = vcmp.lt.s32.totalorder %v2161_v18, 0  ;;  %v370_v58 = vshrl.u32 %v2437_v23, %v369_v10  ;;  %v372_v21 = vshrl.u32 %v2438_v25, %v369_v10  ;;  %v375_v22 = vshrl.u32 %v2439_v28, %v369_v10 }
  0xba   :  { %v219_v17 = vsel %vm2162_vm13, 0, %v2161_v18  ;;  %v374_v18 = vshll.u32 %v2438_v25, %v368_v62  ;;  %v378_v32 = vshrl.u32 %v2440_v31, %v369_v10 }
  0xbb   :  { %v220_v41 = vsub.s32 32, %v219_v17  ;;  %v221_v44 = vshll.u32 %v2631_v42, %v219_v17  ;;  %v224_v45 = vsub.s32 4294967266, %v219_v17  ;;  %v373_v38 = vor.u32 %v372_v21, %v371_v13 }
  0xbc   :  { %v2681_v42 = vmul.u32.u64.low %v2642_v50, %v1122_v61  ;;  %v2682_v0 = vmul.u32.u64.high %v2642_v50, %v1122_v61, %v2681_v42  ;;  %v1133_v50 = vadd.s32 1, %v2686_v48  ;;  %v376_v40 = vor.u32 %v375_v22, %v374_v18 }
  0xbd   :  { %v222_v59 = vshrl.u32 %v204_v47, %v220_v41  ;;  %v225_v60 = vadd.s32 127, %v224_v45  ;;  %v237_v47 = vsel %vm2662_vm9, 0, %v2672_v51  ;;  %v379_v41 = vor.u32 %v378_v32, %v377_v30  ;;  %v1312_v32 = vld [vmem:[%s3865_s7 + $0x8] sm:$0xff] }
  0xbe   :  { %vm1132_vm2 = vc.u32 %v2682_v0, %v2685_v27  ;;  %v383_v45 = vshll.u32 %v2441_v34, %v368_v62  ;;  %v384_v51 = vshrl.u32 %v2442_v37, %v369_v10  ;;  %v390_v56 = vsel %vm386_vm15, %v370_v58, %v373_v38  ;;  %v1196_v58 = vld [vmem:[%s3864_s2] sm:$0xff] }
  0xbf   :  { %v223_v1 = vor.u32 %v222_v59, %v221_v44  ;;  %v226_v3 = vshll.u32 %v225_v60, 23  ;;  %v1134_v26 = vsel %vm1132_vm2, %v1133_v50, %v2686_v48  ;;  %v381_v44 = vshrl.u32 %v2441_v34, %v369_v10 }
  0xc0   :  { %v1135_v36 = vadd.s32 %v1134_v26, %v1130_v52  ;;  %v385_v59 = vor.u32 %v384_v51, %v383_v45  ;;  %v391_v60 = vsel %vm389_vm3, %v379_v41, 2102212464  ;;  %v394_v61 = vsel %vm386_vm15, %v373_v38, %v376_v40  ;;  %v1313_v45 = vld [vmem:[%s3865_s7 + $0x10] sm:$0xff] }
  0xc1   :  { %v227_v6 = vor.u32 4788187, %v226_v3  ;;  %v230_v15 = vcvt.s32.f32 %v223_v1  ;;  %v382_v57 = vor.u32 %v381_v44, %v380_v35  ;;  %v398_v1 = vsel %vm386_vm15, %v376_v40, %v379_v41 }
  0xc2   :  { %v1136_v55 = vadd.s32 536870912, %v1135_v36  ;;  %v564_v3 = vshrl.u32 %v563_v14, 23  ;;  %v392_v52 = vsel %vm388_vm0, %v376_v40, %v391_v60  ;;  %v399_v10 = vsel %vm389_vm3, %v385_v59, 1326507024 }
  0xc3   :  { %v228_v20 = vand.u32 2147483647, %v227_v6  ;;  %v395_v6 = vsel %vm389_vm3, %v382_v57, 920167782  ;;  %v400_v50 = vsel %vm388_vm0, %v382_v57, %v399_v10  ;;  %v2735_v14 = vand.u32 3, %v237_v47  ;;  %v1311_v47 = vld [vmem:[%s3865_s7] sm:$0xff] }
  0xc4   :  { %v2721_v48 = vshrl.u32 %v1136_v55, 30  ;;  %v401_v18 = vsel %vm387_vm1, %v398_v1, %v400_v50  ;;  %v2175_v30 = vadd.s32 4294967169, %v564_v3  ;;  %v393_v35 = vsel %vm387_vm1, %v390_v56, %v392_v52 }
  0xc5   :  { %v231_v17 = vmul.f32 %v230_v15, %v228_v20  ;;  %v396_v15 = vsel %vm388_vm0, %v379_v41, %v395_v6  ;;  %v104_v20 = vpop.permute.xlu1 %103  ;;  %v2747_v22 = vmul.u32.u64.low %v2695_v5, %v401_v18  ;;  %v2748_v26 = vmul.u32.u64.high %v2695_v5, %v401_v18, %v2747_v22 }
  0xc6   :  { %v1138_v13 = vshll.u32 %v2721_v48, 30  ;;  %v397_v11 = vsel %vm387_vm1, %v394_v61, %v396_v15  ;;  %v567_v38 = vand.u32 8388607, %v560_v54  ;;  %v570_v41 = vadd.s32 1, %v2175_v30 }
  0xc7   :  { %v232_v53 = vxor.u32 2147483648, %v231_v17  ;;  %v127_v44 = vmul.f32 %v2560_v8, %v104_v20  ;;  %v2776_v51 = vrot.slane %v1179_v39, %v2623_v33  ;;  %v2443_v56 = vmov 0.0|0.0  }
  0xc8   :  { %v2744_v21 = vsub.s32 %v1135_v36, %v1138_v13  ;;  %v568_v55 = vor.u32 8388608, %v567_v38  ;;  %2247 = vmatprep.subr.bf16.mxu0 %v2443_v56  ;;  %v2248_v57 = vpack.c.bf16 %v1312_v32, %v1311_v47  ;;  %v409_v60 = vmul.u32 %v2695_v5, %v393_v35 }
  0xc9   :  { %v233_v42 = vsel %vm150_vm7, %v232_v53, %v231_v17  ;;  %v2759_v17 = vmul.u32.u64.low %v2695_v5, %v397_v11  ;;  %v2760_v36 = vmul.u32.u64.high %v2695_v5, %v397_v11, %v2759_v17  ;;  %v2779_v53 = vmul.f32 %v2640_v49, %v1196_v58 }
  0xca   :  { %v236_v62 = vsel %vm2662_vm9, %v2569_v12, %v233_v42  ;;  %v1141_v40 = vsub.s32 0, %v2744_v21  ;;  %vm571_vm5 = vcmp.gt.s32.totalorder %v570_v41, 0  ;;  %vm242_vm7 = vcmp.lt.s32.totalorder %v2735_v14, 2  ;;  %2249 = vmatpush3.bf16.msra.mxu0 %v2248_v57 }
  0xcb   :  { %2320 = vcosq.f32 %v236_v62  ;;  %vm411_vm4 = vc.u32 %v2748_v26, %v2759_v17  ;;  %v412_v29 = vadd.s32 1, %v2760_v36  ;;  %v572_v39 = vsel %vm571_vm5, %v570_v41, 0  ;;  %2250 = vmatprep.subr.bf16.mxu0 %v2443_v56 }
  0xcc   :  { %2322 = vsinq.f32 %v236_v62  ;;  %v2196_v59 = vmin.u32 %v1141_v40, %v2744_v21  ;;  %v2251_v61 = vpack.c.bf16 %v1314_v63, %v1313_v45  ;;  %vm243_vm8 = vcmp.eq.s32.totalorder %v2735_v14, 0 }
  0xcd   :  { %v574_v1 = vand.u32 31, %v572_v39  ;;  %v2791_v3 = vadd.f32 %v2565_v9, %v127_v44  ;;  %vm246_vm9 = vcmp.eq.s32.totalorder %v2735_v14, 2  ;;  %v1131_v5 = vadd.s32 %v2685_v27, %v2682_v0 }
  0xce   :  { %v1143_v42 = vclz %v2196_v59  ;;  %v413_v62 = vsel %vm411_vm4, %v412_v29, %v2760_v36  ;;  %v2798_v52 = vshll.u32 %v568_v55, 8  ;;  %v2801_v20 = vshrl.u32 %v572_v39, 5  ;;  %2252 = vmatpush3.bf16.msra.mxu0 %v2251_v61 }
  0xcf   :  { %v414_v13 = vadd.s32 %v413_v62, %v409_v60  ;;  %v575_v15 = vsub.s32 32, %v574_v1  ;;  %v766_v50 = vand.u32 2147483647, %v2791_v3  ;;  %v577_v58 = vshll.u32 %v2437_v23, %v574_v1  ;;  %2253 = vmatprep.subr.bf16.mxu0 %v2443_v56 }
  0xd0   :  { %v2197_v10 = vadd.s32 4294967294, %v1143_v42  ;;  %v580_v22 = vshll.u32 %v2438_v25, %v574_v1  ;;  %v583_v30 = vshll.u32 %v2439_v28, %v574_v1  ;;  %v586_v36 = vshll.u32 %v2440_v31, %v574_v1 }
  0xd1   :  { %v415_v27 = vadd.s32 536870912, %v414_v13  ;;  %v578_v35 = vshrl.u32 %v2438_v25, %v575_v15  ;;  %v581_v44 = vshrl.u32 %v2439_v28, %v575_v15  ;;  %v584_v39 = vshrl.u32 %v2440_v31, %v575_v15 }
  0xd2   :  { %vm2198_vm10 = vcmp.lt.s32.totalorder %v2197_v10, 0  ;;  %v587_v62 = vshrl.u32 %v2441_v34, %v575_v15  ;;  %v589_v14 = vshll.u32 %v2441_v34, %v574_v1  ;;  %vm592_vm11 = vcmp.lt.s32.totalorder %v2801_v20, 1  ;;  %v56_v1 = vld [vmem:[%s3878_s23 + $0x8] sm:$0xff] }
  0xd3   :  { %v1146_v32 = vsel %vm2198_vm10, 0, %v2197_v10  ;;  %v2817_v55 = vshrl.u32 %v415_v27, 30  ;;  %v579_v57 = vor.u32 %v578_v35, %v577_v58  ;;  %v585_v10 = vor.u32 %v584_v39, %v583_v30  ;;  %v1316_v39 = vld [vmem:[%s3865_s7 + $0x28] sm:$0xff] }
  0xd4   :  { %v1147_v40 = vsub.s32 32, %v1146_v32  ;;  %v1151_v41 = vsub.s32 4294967266, %v1146_v32  ;;  %v1148_v63 = vshll.u32 %v2744_v21, %v1146_v32  ;;  %v582_v21 = vor.u32 %v581_v44, %v580_v22 }
  0xd5   :  { %v2321_v6 = vpop.eup %2320  ;;  %v417_v42 = vshll.u32 %v2817_v55, 30  ;;  %vm593_vm12 = vcmp.lt.s32.totalorder %v2801_v20, 2  ;;  %vm594_vm13 = vcmp.lt.s32.totalorder %v2801_v20, 3  ;;  %vm595_vm14 = vcmp.lt.s32.totalorder %v2801_v20, 4 }
  0xd6   :  { %v2323_v11 = vpop.eup %2322  ;;  %v247_v18 = vxor.u32 2147483648, %v2321_v6  ;;  %v1149_v60 = vshrl.u32 %v1131_v5, %v1147_v40  ;;  %v1152_v29 = vadd.s32 127, %v1151_v41  ;;  %v588_v5 = vor.u32 %v587_v62, %v586_v36 }
  0xd7   :  { %v244_v0 = vxor.u32 2147483648, %v2323_v11  ;;  %v600_v22 = vsel %vm592_vm11, %v579_v57, %v582_v21  ;;  %v604_v36 = vsel %vm592_vm11, %v582_v21, %v585_v10  ;;  %vm1077_vm2 = vcmp.lt.s32.totalorder %v2596_v2, 0 }
  0xd8   :  { %v248_v47 = vsel %vm246_vm9, %v247_v18, %v2323_v11  ;;  %v590_v11 = vshrl.u32 %v2442_v37, %v575_v15  ;;  %v2828_v18 = vsub.s32 %v414_v13, %v417_v42  ;;  %v1150_v58 = vor.u32 %v1149_v60, %v1148_v63 }
  0xd9   :  { %v245_v38 = vsel %vm243_vm8, %v2321_v6, %v244_v0  ;;  %v1153_v6 = vshll.u32 %v1152_v29, 23  ;;  %v576_v0 = vshrl.u32 %v2437_v23, %v575_v15  ;;  %v597_v15 = vsel %vm595_vm14, %v585_v10, 2102212464 }
  0xda   :  { %v249_v45 = vsel %vm242_vm7, %v245_v38, %v248_v47  ;;  %v591_v27 = vor.u32 %v590_v11, %v589_v14  ;;  %v769_v47 = vand.u32 2139095040, %v2791_v3  ;;  %v601_v30 = vsel %vm595_vm14, %v588_v5, 920167782 }
  0xdb   :  { %v250_v59 = vsel %vm240_vm6, nan, %v249_v45  ;;  %v1154_v13 = vor.u32 4788187, %v1153_v6  ;;  %v602_v35 = vsel %vm594_vm13, %v585_v10, %v601_v30  ;;  %v773_v38 = vand.u32 8388607, %v766_v50 }
  0xdc   :  { %v1186_v61 = vmul.f32 %v2776_v51, %v250_v59  ;;  %v596_v40 = vsel %vm592_vm11, %v576_v0, %v579_v57  ;;  %v598_v41 = vsel %vm594_vm13, %v582_v21, %v597_v15  ;;  %v603_v44 = vsel %vm593_vm12, %v600_v22, %v602_v35  ;;  %v1315_v57 = vld [vmem:[%s3865_s7 + $0x20] sm:$0xff]  ;;  %v114_v0 = vpop.permute.xlu1 %113 }
  0xdd   :  { %v605_v45 = vsel %vm595_vm14, %v591_v27, 1326507024  ;;  %v2859_v60 = vmul.u32.u64.low %v2798_v52, %v603_v44  ;;  %v2860_v29 = vmul.u32.u64.high %v2798_v52, %v603_v44, %v2859_v60  ;;  %v1155_v42 = vand.u32 2147483647, %v1154_v13 }
  0xde   :  { %v1222_v12 = vadd.f32 %v2779_v53, %v1186_v61  ;;  %v420_v53 = vsub.s32 0, %v2828_v18  ;;  %v606_v59 = vsel %vm594_vm13, %v588_v5, %v605_v45  ;;  %v58_v61 = vld [vmem:[%s3878_s23 + $0x18] sm:$0xff]  ;;  %v1157_v62 = vcvt.s32.f32 %v1150_v58  ;;  %v60_v58 = vld [vmem:[%s3878_s23 + $0x28] sm:$0xff] }
  0xdf   :  { %v607_v14 = vsel %vm593_vm12, %v604_v36, %v606_v59  ;;  %v770_v6 = vshrl.u32 %v769_v47, 23  ;;  %v599_v10 = vsel %vm593_vm12, %v596_v40, %v598_v41  ;;  %v2254_v27 = vpack.c.bf16 %v1316_v39, %v1315_v57 }
  0xe0   :  { %1252 = vrot.lane.b32.xlu0 %v1222_v12, %s2444_s24  ;;  %v2168_v32 = vmin.u32 %v420_v53, %v2828_v18  ;;  %v2877_v11 = vmul.u32.u64.low %v2798_v52, %v607_v14  ;;  %v2878_v12 = vmul.u32.u64.high %v2798_v52, %v607_v14, %v2877_v11  ;;  %v615_v53 = vmul.u32 %v2798_v52, %v599_v10 }
  0xe1   :  { %v2183_v5 = vadd.s32 4294967169, %v770_v6  ;;  %2255 = vmatpush3.bf16.msra.mxu0 %v2254_v27  ;;  %v2885_v13 = vmul.f32 %v1157_v62, %v1155_v42  ;;  %v774_v22 = vor.u32 8388608, %v773_v38  ;;  %v129_v30 = vmul.f32 %v2560_v8, %v114_v0  ;;  %v62_v38 = vld [vmem:[%s3878_s23 + $0x38] sm:$0xff] }
  0xe2   :  { %v422_v63 = vclz %v2168_v32  ;;  %2256 = vmatprep.subr.bf16.mxu0 %v2443_v56  ;;  %vm617_vm0 = vc.u32 %v2878_v12, %v2859_v60  ;;  %v410_v32 = vadd.s32 %v2759_v17, %v2748_v26  ;;  %vm2927_vm7 = vcmp.le.f32.partialorder %v1075_v7, 0.7853982 }
  0xe3   :  { %v776_v20 = vadd.s32 1, %v2183_v5  ;;  %v1159_v44 = vxor.u32 2147483648, %v2885_v13  ;;  %v2903_v26 = vadd.f32 %v2565_v9, %v129_v30  ;;  %vm2445_vm10 = vmmov 0  }
  0xe4   :  { %78 = vperm.xlu0 %2318, %v56_v1   ;;  %v2169_v21 = vadd.s32 4294967294, %v422_v63  ;;  %v618_v1 = vadd.s32 1, %v2860_v29  ;;  %v2900_v63 = vshll.u32 %v774_v22, 8  ;;  %vm356_vm12 = vcmp.lt.s32.totalorder %v2610_v19, 0 }
  0xe5   :  { %vm777_vm1 = vcmp.gt.s32.totalorder %v776_v20, 0  ;;  %v975_v30 = vand.u32 2139095040, %v2903_v26  ;;  %v972_v7 = vand.u32 2147483647, %v2903_v26  ;;  %vm2984_vm13 = vcmp.le.f32.partialorder %v354_v24, 0.7853982 }
  0xe6   :  { %vm2170_vm15 = vcmp.lt.s32.totalorder %v2169_v21, 0  ;;  %v619_v52 = vsel %vm617_vm0, %v618_v1, %v2860_v29  ;;  %v778_v36 = vsel %vm777_vm1, %v776_v20, 0  ;;  %vm562_vm14 = vcmp.lt.s32.totalorder %v2634_v46, 0 }
  0xe7   :  { %v425_v47 = vsel %vm2170_vm15, 0, %v2169_v21  ;;  %v620_v8 = vadd.s32 %v619_v52, %v615_v53  ;;  %v780_v41 = vand.u32 31, %v778_v36 }
  0xe8   :  { %88 = vperm.xlu0 %2318, %v58_v61   ;;  %v430_v15 = vsub.s32 4294967266, %v425_v47  ;;  %v426_v35 = vsub.s32 32, %v425_v47  ;;  %v427_v45 = vshll.u32 %v2828_v18, %v425_v47  ;;  %v779_v61 = vshrl.u32 %v778_v36, 5 }
  0xe9   :  { %v621_v17 = vadd.s32 536870912, %v620_v8  ;;  %v781_v59 = vsub.s32 32, %v780_v41  ;;  %v783_v29 = vshll.u32 %v2437_v23, %v780_v41  ;;  %v786_v57 = vshll.u32 %v2438_v25, %v780_v41 }
  0xea   :  { %v431_v40 = vadd.s32 127, %v430_v15  ;;  %v428_v39 = vshrl.u32 %v410_v32, %v426_v35  ;;  %v789_v42 = vshll.u32 %v2439_v28, %v780_v41  ;;  %v792_v62 = vshll.u32 %v2440_v31, %v780_v41 }
  0xeb   :  { %v2909_v18 = vshrl.u32 %v621_v17, 30  ;;  %v784_v6 = vshrl.u32 %v2438_v25, %v781_v59  ;;  %v787_v9 = vshrl.u32 %v2439_v28, %v781_v59  ;;  %v782_v21 = vshrl.u32 %v2437_v23, %v781_v59 }
  0xec   :  { %98 = vperm.xlu0 %2318, %v60_v58   ;;  %v432_v14 = vshll.u32 %v431_v40, 23  ;;  %v790_v10 = vshrl.u32 %v2440_v31, %v781_v59  ;;  %v793_v11 = vshrl.u32 %v2441_v34, %v781_v59  ;;  %v795_v5 = vshll.u32 %v2441_v34, %v780_v41 }
  0xed   :  { %v623_v0 = vshll.u32 %v2909_v18, 30  ;;  %v785_v27 = vor.u32 %v784_v6, %v783_v29  ;;  %v788_v1 = vor.u32 %v787_v9, %v786_v57  ;;  %v796_v58 = vshrl.u32 %v2442_v37, %v781_v59  ;;  %v1317_v6 = vld [vmem:[%s3865_s7 + $0x30] sm:$0xff] }
  0xee   :  { %v429_v47 = vor.u32 %v428_v39, %v427_v45  ;;  %v791_v53 = vor.u32 %v790_v10, %v789_v42  ;;  %v794_v20 = vor.u32 %v793_v11, %v792_v62  ;;  %vm798_vm3 = vcmp.lt.s32.totalorder %v779_v61, 1 }
  0xef   :  { %v2919_v15 = vsub.s32 %v620_v8, %v623_v0  ;;  %v797_v22 = vor.u32 %v796_v58, %v795_v5  ;;  %vm800_vm4 = vcmp.lt.s32.totalorder %v779_v61, 3  ;;  %v433_v32 = vor.u32 4788187, %v432_v14  ;;  %v1320_v58 = vld [vmem:[%s3865_s7 + $0x48] sm:$0xff] }
  0xf0   :  { %108 = vperm.xlu0 %2318, %v62_v38   ;;  %vm799_vm5 = vcmp.lt.s32.totalorder %v779_v61, 2  ;;  %vm801_vm6 = vcmp.lt.s32.totalorder %v779_v61, 4  ;;  %v806_v35 = vsel %vm798_vm3, %v785_v27, %v788_v1  ;;  %v802_v36 = vsel %vm798_vm3, %v782_v21, %v785_v27 }
  0xf1   :  { %v626_v52 = vsub.s32 0, %v2919_v15  ;;  %v803_v38 = vsel %vm801_vm6, %v791_v53, 2102212464  ;;  %v807_v40 = vsel %vm801_vm6, %v794_v20, 920167782  ;;  %v810_v17 = vsel %vm798_vm3, %v788_v1, %v791_v53 }
  0xf2   :  { %v804_v41 = vsel %vm800_vm4, %v788_v1, %v803_v38  ;;  %v808_v45 = vsel %vm800_vm4, %v791_v53, %v807_v40  ;;  %v811_v8 = vsel %vm801_vm6, %v797_v22, 1326507024  ;;  %v1160_v29 = vsel %vm1077_vm2, %v1159_v44, %v2885_v13  ;;  %v1318_v13 = vld [vmem:[%s3865_s7 + $0x38] sm:$0xff]  ;;  %v1319_v1 = vld [vmem:[%s3865_s7 + $0x40] sm:$0xff] }
  0xf3   :  { %v2176_v57 = vmin.u32 %v626_v52, %v2919_v15  ;;  %v809_v39 = vsel %vm799_vm5, %v806_v35, %v808_v45  ;;  %v812_v42 = vsel %vm800_vm4, %v794_v20, %v811_v8  ;;  %v436_v44 = vcvt.s32.f32 %v429_v47 }
  0xf4   :  { %v2938_v62 = vmul.u32.u64.low %v2900_v63, %v809_v39  ;;  %v2939_v14 = vmul.u32.u64.high %v2900_v63, %v809_v39, %v2938_v62  ;;  %v805_v21 = vsel %vm799_vm5, %v802_v36, %v804_v41  ;;  %v813_v10 = vsel %vm799_vm5, %v810_v17, %v812_v42 }
  0xf5   :  { %v628_v9 = vclz %v2176_v57  ;;  %v434_v11 = vand.u32 2147483647, %v433_v32  ;;  %v2952_v5 = vmul.u32.u64.low %v2900_v63, %v813_v10  ;;  %v2953_v0 = vmul.u32.u64.high %v2900_v63, %v813_v10, %v2952_v5 }
  0xf6   :  { %v976_v27 = vshrl.u32 %v975_v30, 23  ;;  %v2964_v47 = vsel %vm2927_vm7, %v2596_v2, %v1160_v29  ;;  %v616_v61 = vadd.s32 %v2859_v60, %v2878_v12  ;;  %v2257_v20 = vpack.c.bf16 %v1318_v13, %v1317_v6 }
  0xf7   :  { %v2177_v53 = vadd.s32 4294967294, %v628_v9  ;;  %v821_v22 = vmul.u32 %v2900_v63, %v805_v21  ;;  %v824_v30 = vadd.s32 1, %v2939_v14  ;;  %v2972_v35 = vand.u32 8388607, %v972_v7 }
  0xf8   :  { %v2191_v32 = vadd.s32 4294967169, %v976_v27  ;;  %2258 = vmatpush3.bf16.msra.mxu0 %v2257_v20  ;;  %v2260_v52 = vpack.c.bf16 %v1320_v58, %v1319_v1  ;;  %v437_v36 = vmul.f32 %v436_v44, %v434_v11  ;;  %vm823_vm9 = vc.u32 %v2953_v0, %v2938_v62 }
  0xf9   :  { %vm2178_vm8 = vcmp.lt.s32.totalorder %v2177_v53, 0  ;;  %2259 = vmatprep.subr.bf16.mxu0 %v2443_v56  ;;  %v2446_v12 = vmov 0.0   ;;  %v825_v45 = vsel %vm823_vm9, %v824_v30, %v2939_v14  ;;  %2324 = vcosq.f32 %v2964_v47 }
  0xfa   :  { %v631_v38 = vsel %vm2178_vm8, 0, %v2177_v53  ;;  %v982_v60 = vadd.s32 1, %v2191_v32  ;;  %2244 = vmatprep.mubr.msk.f32.mxu0 %vm2445_vm10, %v2446_v12  ;;  %v826_v17 = vadd.s32 %v825_v45, %v821_v22  ;;  %v438_v56 = vxor.u32 2147483648, %v437_v36 }
  0xfb   :  { %v632_v63 = vsub.s32 32, %v631_v38  ;;  %v633_v40 = vshll.u32 %v2919_v15, %v631_v38  ;;  %v636_v41 = vsub.s32 4294967266, %v631_v38  ;;  %v980_v15 = vor.u32 8388608, %v2972_v35 }
  0xfc   :  { %vm983_vm11 = vcmp.gt.s32.totalorder %v982_v60, 0  ;;  %2261 = vmatpush3.bf16.msra.mxu0 %v2260_v52  ;;  %v827_v39 = vadd.s32 536870912, %v826_v17  ;;  %2326 = vsinq.f32 %v2964_v47  ;;  %vm3026_vm4 = vcmp.le.f32.partialorder %v560_v54, 0.7853982 }
  0xfd   :  { %v634_v8 = vshrl.u32 %v616_v61, %v632_v63  ;;  %v637_v29 = vadd.s32 127, %v636_v41  ;;  %v984_v57 = vsel %vm983_vm11, %v982_v60, 0  ;;  %v439_v63 = vsel %vm356_vm12, %v438_v56, %v437_v36 }
  0xfe   :  { %v986_v42 = vand.u32 31, %v984_v57  ;;  %v985_v44 = vshrl.u32 %v984_v57, 5  ;;  %v2988_v9 = vshrl.u32 %v827_v39, 30  ;;  %v1020_v39 = vshll.u32 %v980_v15, 8 }
  0xff   :  { %v635_v6 = vor.u32 %v634_v8, %v633_v40  ;;  %v638_v13 = vshll.u32 %v637_v29, 23  ;;  %vm768_vm8 = vcmp.lt.s32.totalorder %v2791_v3, 0  ;;  %vm3054_vm9 = vcmp.le.f32.partialorder %v766_v50, 0.7853982 }
 0x100   :  { %v987_v21 = vsub.s32 32, %v986_v42  ;;  %v989_v10 = vshll.u32 %v2437_v23, %v986_v42  ;;  %v992_v11 = vshll.u32 %v2438_v25, %v986_v42  ;;  %v995_v1 = vshll.u32 %v2439_v28, %v986_v42 }
 0x101   :  { %v639_v5 = vor.u32 4788187, %v638_v13  ;;  %v642_v27 = vcvt.s32.f32 %v635_v6  ;;  %v998_v58 = vshll.u32 %v2440_v31, %v986_v42  ;;  %v829_v61 = vshll.u32 %v2988_v9, 30 }
 0x102   :  { %v988_v24 = vshrl.u32 %v2437_v23, %v987_v21  ;;  %v990_v53 = vshrl.u32 %v2438_v25, %v987_v21  ;;  %v993_v20 = vshrl.u32 %v2439_v28, %v987_v21  ;;  %v996_v30 = vshrl.u32 %v2440_v31, %v987_v21 }
 0x103   :  { %v640_v22 = vand.u32 2147483647, %v639_v5  ;;  %v999_v32 = vshrl.u32 %v2441_v34, %v987_v21  ;;  %v1001_v35 = vshll.u32 %v2441_v34, %v986_v42  ;;  %v830_v52 = vsub.s32 %v826_v17, %v829_v61  ;;  %v3006_v17 = vpop.eup %2324 }
 0x104   :  { %v991_v38 = vor.u32 %v990_v53, %v989_v10  ;;  %v994_v60 = vor.u32 %v993_v20, %v992_v11  ;;  %v1002_v12 = vshrl.u32 %v2442_v37, %v987_v21  ;;  %v997_v40 = vor.u32 %v996_v30, %v995_v1 }
 0x105   :  { %v1000_v41 = vor.u32 %v999_v32, %v998_v58  ;;  %vm1004_vm15 = vcmp.lt.s32.totalorder %v985_v44, 1  ;;  %v643_v45 = vmul.f32 %v642_v27, %v640_v22  ;;  %v832_v8 = vsub.s32 0, %v830_v52 }
 0x106   :  { %v1003_v29 = vor.u32 %v1002_v12, %v1001_v35  ;;  %vm1006_vm0 = vcmp.lt.s32.totalorder %v985_v44, 3  ;;  %vm1005_vm1 = vcmp.lt.s32.totalorder %v985_v44, 2  ;;  %vm1007_vm3 = vcmp.lt.s32.totalorder %v985_v44, 4 }
 0x107   :  { %v1012_v57 = vsel %vm1004_vm15, %v991_v38, %v994_v60  ;;  %v2184_v42 = vmin.u32 %v832_v8, %v830_v52  ;;  %v1008_v6 = vsel %vm1004_vm15, %v988_v24, %v991_v38  ;;  %v1009_v13 = vsel %vm1007_vm3, %v997_v40, 2102212464 }
 0x108   :  { %v1013_v21 = vsel %vm1007_vm3, %v1000_v41, 920167782  ;;  %v1010_v36 = vsel %vm1006_vm0, %v994_v60, %v1009_v13  ;;  %v1016_v10 = vsel %vm1004_vm15, %v994_v60, %v997_v40  ;;  %v1017_v11 = vsel %vm1007_vm3, %v1003_v29, 1326507024 }
 0x109   :  { %v1014_v56 = vsel %vm1006_vm0, %v997_v40, %v1013_v21  ;;  %v644_v5 = vxor.u32 2147483648, %v643_v45  ;;  %v834_v27 = vclz %v2184_v42  ;;  %v442_v1 = vsel %vm2984_vm13, %v2610_v19, %v439_v63 }
 0x10a   :  { %v1015_v15 = vsel %vm1005_vm1, %v1012_v57, %v1014_v56  ;;  %v1018_v58 = vsel %vm1006_vm0, %v1000_v41, %v1017_v11  ;;  %v1011_v20 = vsel %vm1005_vm1, %v1008_v6, %v1010_v36  ;;  %2328 = vsinq.f32 %v442_v1  ;;  %v2327_v57 = vpop.eup %2326  ;;  %v1202_v11 = vld [vmem:[%s3864_s2 + $0x30] sm:$0xff] }
 0x10b   :  { %v3018_v61 = vmul.u32.u64.low %v1020_v39, %v1015_v15  ;;  %v3019_v24 = vmul.u32.u64.high %v1020_v39, %v1015_v15, %v3018_v61  ;;  %v2185_v53 = vadd.s32 4294967294, %v834_v27  ;;  %v1019_v22 = vsel %vm1005_vm1, %v1016_v10, %v1018_v58 }
 0x10c   :  { %v3030_v30 = vmul.u32.u64.low %v1020_v39, %v1019_v22  ;;  %v3031_v32 = vmul.u32.u64.high %v1020_v39, %v1019_v22, %v3030_v30  ;;  %v645_v35 = vsel %vm562_vm14, %v644_v5, %v643_v45  ;;  %v822_v38 = vadd.s32 %v2938_v62, %v2953_v0 }
 0x10d   :  { %vm2186_vm5 = vcmp.lt.s32.totalorder %v2185_v53, 0  ;;  %2330 = vcosq.f32 %v442_v1  ;;  %v1027_v60 = vmul.u32 %v1020_v39, %v1011_v20  ;;  %v1030_v12 = vadd.s32 1, %v3019_v24 }
 0x10e   :  { %v837_v44 = vsel %vm2186_vm5, 0, %v2185_v53  ;;  %v648_v41 = vsel %vm3026_vm4, %v2634_v46, %v645_v35  ;;  %vm1029_vm6 = vc.u32 %v3031_v32, %v3018_v61  ;;  %v1161_v0 = vsub.s32 4, %v2721_v48 }
 0x10f   :  { %v838_v54 = vsub.s32 32, %v837_v44  ;;  %v839_v63 = vshll.u32 %v830_v52, %v837_v44  ;;  %v842_v40 = vsub.s32 4294967266, %v837_v44  ;;  %v1031_v62 = vsel %vm1029_vm6, %v1030_v12, %v3019_v24 }
 0x110   :  { %v1032_v29 = vadd.s32 %v1031_v62, %v1027_v60  ;;  %2332 = vcosq.f32 %v648_v41  ;;  %v1162_v52 = vsel %vm1077_vm2, %v1161_v0, %v2721_v48  ;;  %v440_v10 = vsub.s32 4, %v2817_v55 }
 0x111   :  { %v840_v45 = vshrl.u32 %v822_v38, %v838_v54  ;;  %v843_v8 = vadd.s32 127, %v842_v40  ;;  %2334 = vsinq.f32 %v648_v41  ;;  %v1164_v13 = vsel %vm2927_vm7, 0, %v1162_v52 }
 0x112   :  { %v1033_v6 = vadd.s32 536870912, %v1032_v29  ;;  %v1168_v56 = vand.u32 3, %v1164_v13  ;;  %v1171_v48 = vxor.u32 2147483648, %v2327_v57  ;;  %v1174_v27 = vxor.u32 2147483648, %v3006_v17 }
 0x113   :  { %v841_v39 = vor.u32 %v840_v45, %v839_v63  ;;  %v844_v42 = vshll.u32 %v843_v8, 23  ;;  %v441_v59 = vsel %vm356_vm12, %v440_v10, %v2817_v55  ;;  %vm1167_vm11 = vweird.f32 %v2596_v2  ;;  %v1205_v55 = vld [vmem:[%s3864_s2 + $0x48] sm:$0xff] }
 0x114   :  { %v3058_v5 = vshrl.u32 %v1033_v6, 30  ;;  %v2329_v15 = vpop.eup %2328  ;;  %vm1170_vm2 = vcmp.eq.s32.totalorder %v1168_v56, 0  ;;  %vm1173_vm7 = vcmp.eq.s32.totalorder %v1168_v56, 2  ;;  %vm1169_vm10 = vcmp.lt.s32.totalorder %v1168_v56, 2 }
 0x115   :  { %v845_v21 = vor.u32 4788187, %v844_v42  ;;  %v848_v36 = vcvt.s32.f32 %v841_v39  ;;  %v1172_v50 = vsel %vm1170_vm2, %v3006_v17, %v1171_v48  ;;  %v1175_v53 = vsel %vm1173_vm7, %v1174_v27, %v2327_v57  ;;  %v1198_v57 = vld [vmem:[%s3864_s2 + $0x10] sm:$0xff] }
 0x116   :  { %v1035_v24 = vshll.u32 %v3058_v5, 30  ;;  %v1176_v22 = vsel %vm1169_vm10, %v1172_v50, %v1175_v53  ;;  %v443_v30 = vsel %vm2984_vm13, 0, %v441_v59  ;;  %v450_v60 = vxor.u32 2147483648, %v2329_v15 }
 0x117   :  { %v846_v1 = vand.u32 2147483647, %v845_v21  ;;  %v2331_v58 = vpop.eup %2330  ;;  %v1177_v38 = vsel %vm1167_vm11, nan, %v1176_v22  ;;  %v447_v44 = vand.u32 3, %v443_v30  ;;  %v1221_v54 = vmul.f32 %v2640_v49, %v1205_v55 }
 0x118   :  { %v3069_v35 = vsub.s32 %v1032_v29, %v1035_v24  ;;  %v1195_v17 = vmul.f32 %v2776_v51, %v1177_v38  ;;  %v453_v63 = vxor.u32 2147483648, %v2331_v58  ;;  %vm446_vm0 = vweird.f32 %v2610_v19 }
 0x119   :  { %v849_v20 = vmul.f32 %v848_v36, %v846_v1  ;;  %vm448_vm12 = vcmp.lt.s32.totalorder %v447_v44, 2  ;;  %vm449_vm15 = vcmp.eq.s32.totalorder %v447_v44, 0  ;;  %vm452_vm13 = vcmp.eq.s32.totalorder %v447_v44, 2 }
 0x11a   :  { %v1038_v2 = vsub.s32 0, %v3069_v35  ;;  %v2333_v14 = vpop.eup %2332  ;;  %v1231_v41 = vadd.f32 %v1221_v54, %v1195_v17  ;;  %v451_v45 = vsel %vm449_vm15, %v2331_v58, %v450_v60  ;;  %v454_v29 = vsel %vm452_vm13, %v453_v63, %v2329_v15  ;;  %v1200_v15 = vld [vmem:[%s3864_s2 + $0x20] sm:$0xff] }
 0x11b   :  { %v850_v12 = vxor.u32 2147483648, %v849_v20  ;;  %v2335_v8 = vpop.eup %2334  ;;  %v646_v39 = vsub.s32 4, %v2909_v18  ;;  %v455_v19 = vsel %vm448_vm12, %v451_v45, %v454_v29  ;;  %v1214_v42 = vmul.f32 %v2640_v49, %v1198_v57 }
 0x11c   :  { %v2192_v0 = vmin.u32 %v1038_v2, %v3069_v35  ;;  %1270 = vrot.lane.b32.xlu0 %v1231_v41, %s2444_s24  ;;  %v456_v6 = vsel %vm446_vm0, nan, %v455_v19  ;;  %v656_v56 = vxor.u32 2147483648, %v2335_v8  ;;  %v659_v10 = vxor.u32 2147483648, %v2333_v14 }
 0x11d   :  { %v851_v40 = vsel %vm768_vm8, %v850_v12, %v849_v20  ;;  %v647_v13 = vsel %vm562_vm14, %v646_v39, %v2909_v18  ;;  %v1188_v21 = vmul.f32 %v2776_v51, %v456_v6  ;;  %v852_v1 = vsub.s32 4, %v2988_v9 }
 0x11e   :  { %v854_v62 = vsel %vm3054_vm9, %v2791_v3, %v851_v40  ;;  %v1040_v52 = vclz %v2192_v0  ;;  %v649_v36 = vsel %vm3026_vm4, 0, %v647_v13  ;;  %v1028_v59 = vadd.s32 %v3018_v61, %v3031_v32 }
 0x11f   :  { %2336 = vcosq.f32 %v854_v62  ;;  %v653_v27 = vand.u32 3, %v649_v36  ;;  %v1224_v58 = vadd.f32 %v1214_v42, %v1188_v21  ;;  %vm652_vm14 = vweird.f32 %v2634_v46 }
 0x120   :  { %2338 = vsinq.f32 %v854_v62  ;;  %v2193_v48 = vadd.s32 4294967294, %v1040_v52  ;;  %v1216_v18 = vmul.f32 %v2640_v49, %v1200_v15  ;;  %v853_v53 = vsel %vm768_vm8, %v852_v1, %v2988_v9 }
 0x121   :  { %vm654_vm3 = vcmp.lt.s32.totalorder %v653_v27, 2  ;;  %vm655_vm4 = vcmp.eq.s32.totalorder %v653_v27, 0  ;;  %vm658_vm5 = vcmp.eq.s32.totalorder %v653_v27, 2  ;;  %1256 = vrot.lane.b32.xlu0 %v1224_v58, %s2444_s24  ;;  %v855_v30 = vsel %vm3054_vm9, 0, %v853_v53  ;;  %v1204_v27 = vld [vmem:[%s3864_s2 + $0x40] sm:$0xff] }
 0x122   :  { %vm2194_vm1 = vcmp.lt.s32.totalorder %v2193_v48, 0  ;;  %v657_v24 = vsel %vm655_vm4, %v2333_v14, %v656_v56  ;;  %v660_v50 = vsel %vm658_vm5, %v659_v10, %v2335_v8  ;;  %v859_v60 = vand.u32 3, %v855_v30 }
 0x123   :  { %v1043_v47 = vsel %vm2194_vm1, 0, %v2193_v48  ;;  %v661_v46 = vsel %vm654_vm3, %v657_v24, %v660_v50  ;;  %vm858_vm9 = vweird.f32 %v2791_v3  ;;  %v1218_v0 = vmul.f32 %v2640_v49, %v1202_v11 }
 0x124   :  { %v1044_v20 = vsub.s32 32, %v1043_v47  ;;  %v1045_v61 = vshll.u32 %v3069_v35, %v1043_v47  ;;  %v1048_v32 = vsub.s32 4294967266, %v1043_v47  ;;  %v662_v22 = vsel %vm652_vm14, nan, %v661_v46  ;;  %v1232_v47 = vld [vmem:[%s3866_s0] sm:$0xff] }
 0x125   :  { %v1190_v44 = vmul.f32 %v2776_v51, %v662_v22  ;;  %vm860_vm6 = vcmp.lt.s32.totalorder %v859_v60, 2  ;;  %vm861_vm8 = vcmp.eq.s32.totalorder %v859_v60, 0  ;;  %vm864_vm2 = vcmp.eq.s32.totalorder %v859_v60, 2  ;;  %v3151_v46 = vld [vmem:[%s3862_s4] ss:$0 sm:$0xff] }
 0x126   :  { %v1046_v38 = vshrl.u32 %v1028_v59, %v1044_v20  ;;  %v1049_v55 = vadd.s32 127, %v1048_v32  ;;  %vm974_vm7 = vcmp.lt.s32.totalorder %v2903_v26, 0  ;;  %vm973_vm10 = vcmp.le.f32.partialorder %v972_v7, 0.7853982 }
 0x127   :  { %v1226_v2 = vadd.f32 %v1216_v18, %v1190_v44  ;;  %v1058_v52 = vsub.s32 4, %v3058_v5  ;;  %vm1064_vm13 = vweird.f32 %v2903_v26  ;;  %vm1282_vm0 = vcmask 261120  }
 0x128   :  { %v1047_v54 = vor.u32 %v1046_v38, %v1045_v61  ;;  %v1050_v63 = vshll.u32 %v1049_v55, 23  ;;  %vm1293_vm14 = vcmask 392192   ;;  %vm1328_vm1 = vcmask 654336   ;;  %v2432_v61 = vld [vmem:[%s3861_s3] ss:$0 sm:$0xff] }
 0x129   :  { %v2337_v12 = vpop.eup %2336  ;;  %1260 = vrot.lane.b32.xlu0 %v1226_v2, %s2444_s24  ;;  %v1059_v13 = vsel %vm974_vm7, %v1058_v52, %v3058_v5  ;;  %v1220_v5 = vmul.f32 %v2640_v49, %v1204_v27 }
 0x12a   :  { %v2339_v17 = vpop.eup %2338  ;;  %v865_v35 = vxor.u32 2147483648, %v2337_v12  ;;  %v1051_v14 = vor.u32 4788187, %v1050_v63  ;;  %v1054_v40 = vcvt.s32.f32 %v1047_v54  ;;  %v1061_v21 = vsel %vm973_vm10, 0, %v1059_v13 }
 0x12b   :  { %v862_v9 = vxor.u32 2147483648, %v2339_v17  ;;  %v1065_v36 = vand.u32 3, %v1061_v21 }
 0x12c   :  { %v866_v45 = vsel %vm864_vm2, %v865_v35, %v2339_v17  ;;  %v1052_v8 = vand.u32 2147483647, %v1051_v14 }
 0x12d   :  { %v863_v41 = vsel %vm861_vm8, %v2337_v12, %v862_v9  ;;  %vm1070_vm11 = vcmp.eq.s32.totalorder %v1065_v36, 2  ;;  %vm1067_vm12 = vcmp.eq.s32.totalorder %v1065_v36, 0  ;;  %vm1066_vm15 = vcmp.lt.s32.totalorder %v1065_v36, 2 }
 0x12e   :  { %v867_v62 = vsel %vm860_vm6, %v863_v41, %v866_v45  ;;  %v1055_v57 = vmul.f32 %v1054_v40, %v1052_v8 }
 0x12f   :  { %v868_v29 = vsel %vm858_vm9, nan, %v867_v62 }
 0x130   :  { %v1192_v39 = vmul.f32 %v2776_v51, %v868_v29  ;;  %v1056_v19 = vxor.u32 2147483648, %v1055_v57 }
 0x132   :  { %v1228_v42 = vadd.f32 %v1218_v0, %v1192_v39  ;;  %v1057_v3 = vsel %vm974_vm7, %v1056_v19, %v1055_v57 }
 0x133   :  { %v1060_v6 = vsel %vm973_vm10, %v2903_v26, %v1057_v3 }
 0x134   :  { %1264 = vrot.lane.b32.xlu0 %v1228_v42, %s2444_s24  ;;  %2340 = vcosq.f32 %v1060_v6 }
 0x135   :  { %2342 = vsinq.f32 %v1060_v6 }
 0x13e   :  { %v2341_v56 = vpop.eup %2340 }
 0x13f   :  { %v2343_v10 = vpop.eup %2342  ;;  %v1071_v7 = vxor.u32 2147483648, %v2341_v56 }
 0x140   :  { %v1068_v48 = vxor.u32 2147483648, %v2343_v10 }
 0x141   :  { %v1072_v15 = vsel %vm1070_vm11, %v1071_v7, %v2343_v10 }
 0x142   :  { %v1069_v1 = vsel %vm1067_vm12, %v2341_v56, %v1068_v48 }
 0x143   :  { %v1073_v59 = vsel %vm1066_vm15, %v1069_v1, %v1072_v15 }
 0x144   :  { %v1074_v58 = vsel %vm1064_vm13, nan, %v1073_v59 }
 0x145   :  { %v1194_v18 = vmul.f32 %v2776_v51, %v1074_v58 }
 0x147   :  { %v1230_v24 = vadd.f32 %v1220_v5, %v1194_v18 }
 0x149   :  { %1268 = vrot.lane.b32.xlu0 %v1230_v24, %s2444_s24 }
 0x152   :  { %v1253_v50 = vpop.permute.xlu0 %1252 }
 0x153   :  { %v1283_v26 = vsel %vm1282_vm0, %v1232_v47, %v1253_v50 }
 0x154   :  { %1294 = vst.msk [vmem:[%s3867_s15] sm:$0xff] %vm1293_vm14, %v1283_v26  ;;  %v1310_v53 = vsel %vm1293_vm14, %v1283_v26, %v2585_v43 }
 0x155   :  { %2245 = vmatmul.mubr.msk.f32.vlgmr.msra.gmra.mrb[0].mxu0 %vm1328_vm1, %v1310_v53 }
 0x163   :  { %v79_v20 = vpop.permute.xlu0 %78 }
 0x164   :  { %v122_v32 = vmul.f32 %v2432_v61, %v79_v20 }
 0x166   :  { %v3154_v22 = vadd.f32 %v3151_v46, %v122_v32 }
 0x167   :  { %v89_v30 = vpop.permute.xlu0 %88 }
 0x168   :  { %v251_v38 = vand.u32 2147483647, %v3154_v22  ;;  %v254_v43 = vand.u32 2139095040, %v3154_v22  ;;  %v124_v55 = vmul.f32 %v2432_v61, %v89_v30 }
 0x16a   :  { %v255_v44 = vshrl.u32 %v254_v43, 23  ;;  %v258_v60 = vand.u32 8388607, %v251_v38  ;;  %v3161_v12 = vadd.f32 %v3151_v46, %v124_v55 }
 0x16b   :  { %v99_v17 = vpop.permute.xlu0 %98 }
 0x16c   :  { %v2163_v54 = vadd.s32 4294967169, %v255_v44  ;;  %v457_v63 = vand.u32 2147483647, %v3161_v12  ;;  %v460_v2 = vand.u32 2139095040, %v3161_v12  ;;  %v126_v9 = vmul.f32 %v2432_v61, %v99_v17 }
 0x16d   :  { %v259_v35 = vor.u32 8388608, %v258_v60 }
 0x16e   :  { %v261_v11 = vadd.s32 1, %v2163_v54  ;;  %v464_v14 = vand.u32 8388607, %v457_v63  ;;  %v461_v40 = vshrl.u32 %v460_v2, 23  ;;  %v3168_v41 = vadd.f32 %v3151_v46, %v126_v9 }
 0x16f   :  { %v109_v8 = vpop.permute.xlu0 %108  ;;  %v3171_v19 = vshll.u32 %v259_v35, 8 }
 0x170   :  { %vm262_vm3 = vcmp.gt.s32.totalorder %v261_v11, 0  ;;  %v465_v45 = vor.u32 8388608, %v464_v14  ;;  %v2171_v0 = vadd.s32 4294967169, %v461_v40  ;;  %v663_v29 = vand.u32 2147483647, %v3168_v41 }
 0x171   :  { %v263_v62 = vsel %vm262_vm3, %v261_v11, 0  ;;  %v666_v3 = vand.u32 2139095040, %v3168_v41  ;;  %v128_v6 = vmul.f32 %v2432_v61, %v109_v8 }
 0x172   :  { %v264_v57 = vshrl.u32 %v263_v62, 5  ;;  %v265_v39 = vand.u32 31, %v263_v62  ;;  %v467_v42 = vadd.s32 1, %v2171_v0  ;;  %v3173_v52 = vshll.u32 %v465_v45, 8 }
 0x173   :  { %v3180_v56 = vand.u32 8388607, %v663_v29  ;;  %v667_v14 = vshrl.u32 %v666_v3, 23  ;;  %v3201_v40 = vadd.f32 %v3151_v46, %v128_v6 }
 0x174   :  { %v266_v13 = vsub.s32 32, %v265_v39  ;;  %v268_v21 = vshll.u32 %v2437_v23, %v265_v39  ;;  %v271_v36 = vshll.u32 %v2438_v25, %v265_v39  ;;  %v274_v10 = vshll.u32 %v2439_v28, %v265_v39 }
 0x175   :  { %v277_v7 = vshll.u32 %v2440_v31, %v265_v39  ;;  %v280_v48 = vshll.u32 %v2441_v34, %v265_v39  ;;  %vm283_vm4 = vcmp.lt.s32.totalorder %v264_v57, 1  ;;  %vm284_vm5 = vcmp.lt.s32.totalorder %v264_v57, 2 }
 0x176   :  { %v269_v27 = vshrl.u32 %v2438_v25, %v266_v13  ;;  %v272_v15 = vshrl.u32 %v2439_v28, %v266_v13  ;;  %v275_v1 = vshrl.u32 %v2440_v31, %v266_v13  ;;  %v267_v59 = vshrl.u32 %v2437_v23, %v266_v13 }
 0x177   :  { %v278_v5 = vshrl.u32 %v2441_v34, %v266_v13  ;;  %v281_v58 = vshrl.u32 %v2442_v37, %v266_v13  ;;  %vm285_vm6 = vcmp.lt.s32.totalorder %v264_v57, 3  ;;  %vm468_vm8 = vcmp.gt.s32.totalorder %v467_v42, 0 }
 0x178   :  { %v270_v18 = vor.u32 %v269_v27, %v268_v21  ;;  %v273_v47 = vor.u32 %v272_v15, %v271_v36  ;;  %v276_v24 = vor.u32 %v275_v1, %v274_v10  ;;  %vm286_vm2 = vcmp.lt.s32.totalorder %v264_v57, 4 }
 0x179   :  { %v279_v50 = vor.u32 %v278_v5, %v277_v7  ;;  %v282_v26 = vor.u32 %v281_v58, %v280_v48  ;;  %v469_v53 = vsel %vm468_vm8, %v467_v42, 0 }
 0x17a   :  { %v287_v20 = vsel %vm283_vm4, %v267_v59, %v270_v18  ;;  %v288_v61 = vsel %vm286_vm2, %v276_v24, 2102212464  ;;  %v291_v32 = vsel %vm283_vm4, %v270_v18, %v273_v47  ;;  %v295_v30 = vsel %vm283_vm4, %v273_v47, %v276_v24 }
 0x17b   :  { %v289_v43 = vsel %vm285_vm6, %v273_v47, %v288_v61  ;;  %v292_v55 = vsel %vm286_vm2, %v279_v50, 920167782  ;;  %v296_v44 = vsel %vm286_vm2, %v282_v26, 1326507024  ;;  %v470_v60 = vshrl.u32 %v469_v53, 5 }
 0x17c   :  { %v290_v17 = vsel %vm284_vm5, %v287_v20, %v289_v43  ;;  %v293_v54 = vsel %vm285_vm6, %v276_v24, %v292_v55  ;;  %v297_v2 = vsel %vm285_vm6, %v279_v50, %v296_v44  ;;  %v471_v9 = vand.u32 31, %v469_v53 }
 0x17d   :  { %v294_v35 = vsel %vm284_vm5, %v291_v32, %v293_v54  ;;  %v298_v11 = vsel %vm284_vm5, %v295_v30, %v297_v2  ;;  %v306_v39 = vmul.u32 %v3171_v19, %v290_v17  ;;  %vm489_vm9 = vcmp.lt.s32.totalorder %v470_v60, 1 }
 0x17e   :  { %v3204_v45 = vmul.u32.u64.low %v3171_v19, %v298_v11  ;;  %v3205_v8 = vmul.u32.u64.high %v3171_v19, %v298_v11, %v3204_v45  ;;  %v3208_v62 = vmul.u32.u64.low %v3171_v19, %v294_v35  ;;  %v3209_v0 = vmul.u32.u64.high %v3171_v19, %v294_v35, %v3208_v62 }
 0x17f   :  { %v472_v42 = vsub.s32 32, %v471_v9  ;;  %v474_v13 = vshll.u32 %v2437_v23, %v471_v9  ;;  %v477_v57 = vshll.u32 %v2438_v25, %v471_v9  ;;  %v480_v3 = vshll.u32 %v2439_v28, %v471_v9  ;;  %v1197_v45 = vld [vmem:[%s3864_s2 + $0x8] sm:$0xff] }
 0x180   :  { %v483_v46 = vshll.u32 %v2440_v31, %v471_v9  ;;  %v486_v6 = vshll.u32 %v2441_v34, %v471_v9  ;;  %vm491_vm7 = vcmp.lt.s32.totalorder %v470_v60, 3  ;;  %vm308_vm10 = vc.u32 %v3205_v8, %v3208_v62 }
 0x181   :  { %v475_v21 = vshrl.u32 %v2438_v25, %v472_v42  ;;  %v478_v36 = vshrl.u32 %v2439_v28, %v472_v42  ;;  %v481_v10 = vshrl.u32 %v2440_v31, %v472_v42  ;;  %v309_v19 = vadd.s32 1, %v3209_v0 }
 0x182   :  { %v473_v7 = vshrl.u32 %v2437_v23, %v472_v42  ;;  %v484_v48 = vshrl.u32 %v2441_v34, %v472_v42  ;;  %v487_v59 = vshrl.u32 %v2442_v37, %v472_v42  ;;  %vm492_vm11 = vcmp.lt.s32.totalorder %v470_v60, 4 }
 0x183   :  { %v476_v27 = vor.u32 %v475_v21, %v474_v13  ;;  %v479_v15 = vor.u32 %v478_v36, %v477_v57  ;;  %v482_v1 = vor.u32 %v481_v10, %v480_v3  ;;  %v310_v5 = vsel %vm308_vm10, %v309_v19, %v3209_v0 }
 0x184   :  { %v485_v58 = vor.u32 %v484_v48, %v483_v46  ;;  %v2179_v18 = vadd.s32 4294967169, %v667_v14  ;;  %v311_v47 = vadd.s32 %v310_v5, %v306_v39  ;;  %v488_v24 = vor.u32 %v487_v59, %v486_v6 }
 0x185   :  { %v493_v50 = vsel %vm489_vm9, %v473_v7, %v476_v27  ;;  %v494_v26 = vsel %vm492_vm11, %v482_v1, 2102212464  ;;  %v497_v20 = vsel %vm489_vm9, %v476_v27, %v479_v15  ;;  %v501_v32 = vsel %vm489_vm9, %v479_v15, %v482_v1 }
 0x186   :  { %v495_v53 = vsel %vm491_vm7, %v479_v15, %v494_v26  ;;  %v498_v61 = vsel %vm492_vm11, %v485_v58, 920167782  ;;  %v312_v30 = vadd.s32 536870912, %v311_v47  ;;  %vm490_vm12 = vcmp.lt.s32.totalorder %v470_v60, 2 }
 0x187   :  { %v499_v43 = vsel %vm491_vm7, %v482_v1, %v498_v61  ;;  %v502_v55 = vsel %vm492_vm11, %v488_v24, 1326507024  ;;  %v496_v44 = vsel %vm490_vm12, %v493_v50, %v495_v53  ;;  %v671_v2 = vor.u32 8388608, %v3180_v56 }
 0x188   :  { %v500_v17 = vsel %vm490_vm12, %v497_v20, %v499_v43  ;;  %v503_v54 = vsel %vm491_vm7, %v485_v58, %v502_v55  ;;  %v3233_v9 = vshrl.u32 %v312_v30, 30  ;;  %v673_v60 = vadd.s32 1, %v2179_v18 }
 0x189   :  { %v504_v35 = vsel %vm490_vm12, %v501_v32, %v503_v54  ;;  %v3236_v11 = vmul.u32.u64.low %v3173_v52, %v500_v17  ;;  %v3237_v14 = vmul.u32.u64.high %v3173_v52, %v500_v17, %v3236_v11  ;;  %v869_v56 = vand.u32 2147483647, %v3201_v40 }
 0x18a   :  { %v3244_v0 = vmul.u32.u64.low %v3173_v52, %v504_v35  ;;  %v3245_v39 = vmul.u32.u64.high %v3173_v52, %v504_v35, %v3244_v0  ;;  %v314_v42 = vshll.u32 %v3233_v9, 30  ;;  %v872_v13 = vand.u32 2139095040, %v3201_v40 }
 0x18b   :  { %v307_v57 = vadd.s32 %v3208_v62, %v3205_v8  ;;  %v512_v3 = vmul.u32 %v3173_v52, %v496_v44  ;;  %vm674_vm15 = vcmp.gt.s32.totalorder %v673_v60, 0  ;;  %v3253_v46 = vmul.f32 %v2640_v49, %v1197_v45 }
 0x18c   :  { %v3255_v6 = vsub.s32 %v311_v47, %v314_v42  ;;  %v515_v21 = vadd.s32 1, %v3237_v14  ;;  %v675_v36 = vsel %vm674_vm15, %v673_v60, 0  ;;  %v3258_v10 = vshll.u32 %v671_v2, 8 }
 0x18d   :  { %vm514_vm13 = vc.u32 %v3245_v39, %v3236_v11  ;;  %v676_v19 = vshrl.u32 %v675_v36, 5  ;;  %v677_v7 = vand.u32 31, %v675_v36  ;;  %v337_v8 = vsub.s32 4, %v3233_v9 }
 0x18e   :  { %v317_v52 = vsub.s32 0, %v3255_v6  ;;  %v516_v62 = vsel %vm514_vm13, %v515_v21, %v3237_v14  ;;  %v873_v48 = vshrl.u32 %v872_v13, 23  ;;  %v3267_v27 = vand.u32 8388607, %v869_v56 }
 0x18f   :  { %v517_v15 = vadd.s32 %v516_v62, %v512_v3  ;;  %v678_v1 = vsub.s32 32, %v677_v7  ;;  %v680_v59 = vshll.u32 %v2437_v23, %v677_v7  ;;  %v683_v5 = vshll.u32 %v2438_v25, %v677_v7 }
 0x190   :  { %v2164_v58 = vmin.u32 %v317_v52, %v3255_v6  ;;  %v686_v18 = vshll.u32 %v2439_v28, %v677_v7  ;;  %v689_v47 = vshll.u32 %v2440_v31, %v677_v7  ;;  %v692_v24 = vshll.u32 %v2441_v34, %v677_v7 }
 0x191   :  { %v518_v50 = vadd.s32 536870912, %v517_v15  ;;  %v679_v26 = vshrl.u32 %v2437_v23, %v678_v1  ;;  %v681_v53 = vshrl.u32 %v2438_v25, %v678_v1  ;;  %v684_v20 = vshrl.u32 %v2439_v28, %v678_v1 }
 0x192   :  { %v319_v61 = vclz %v2164_v58  ;;  %v687_v32 = vshrl.u32 %v2440_v31, %v678_v1  ;;  %v690_v30 = vshrl.u32 %v2441_v34, %v678_v1  ;;  %v693_v43 = vshrl.u32 %v2442_v37, %v678_v1 }
 0x193   :  { %v3281_v55 = vshrl.u32 %v518_v50, 30  ;;  %v682_v44 = vor.u32 %v681_v53, %v680_v59  ;;  %v685_v17 = vor.u32 %v684_v20, %v683_v5  ;;  %vm695_vm3 = vcmp.lt.s32.totalorder %v676_v19, 1 }
 0x194   :  { %v2165_v54 = vadd.s32 4294967294, %v319_v61  ;;  %v688_v2 = vor.u32 %v687_v32, %v686_v18  ;;  %v691_v35 = vor.u32 %v690_v30, %v689_v47  ;;  %v694_v14 = vor.u32 %v693_v43, %v692_v24 }
 0x195   :  { %vm253_vm4 = vcmp.lt.s32.totalorder %v3154_v22, 0  ;;  %v520_v45 = vshll.u32 %v3281_v55, 30  ;;  %vm696_vm5 = vcmp.lt.s32.totalorder %v676_v19, 2  ;;  %vm697_vm6 = vcmp.lt.s32.totalorder %v676_v19, 3 }
 0x196   :  { %vm698_vm8 = vcmp.lt.s32.totalorder %v676_v19, 4  ;;  %vm2166_vm2 = vcmp.lt.s32.totalorder %v2165_v54, 0  ;;  %v699_v0 = vsel %vm695_vm3, %v679_v26, %v682_v44  ;;  %v703_v42 = vsel %vm695_vm3, %v682_v44, %v685_v17 }
 0x197   :  { %v700_v60 = vsel %vm698_vm8, %v688_v2, 2102212464  ;;  %v322_v13 = vsel %vm2166_vm2, 0, %v2165_v54  ;;  %v3288_v3 = vsub.s32 %v517_v15, %v520_v45  ;;  %v704_v36 = vsel %vm698_vm8, %v691_v35, 920167782 }
 0x198   :  { %v701_v21 = vsel %vm697_vm6, %v685_v17, %v700_v60  ;;  %v323_v7 = vsub.s32 32, %v322_v13  ;;  %v324_v52 = vshll.u32 %v3255_v6, %v322_v13  ;;  %v327_v62 = vsub.s32 4294967266, %v322_v13 }
 0x199   :  { %v702_v1 = vsel %vm696_vm5, %v699_v0, %v701_v21  ;;  %v523_v59 = vsub.s32 0, %v3288_v3  ;;  %v705_v5 = vsel %vm697_vm6, %v688_v2, %v704_v36  ;;  %v707_v58 = vsel %vm695_vm3, %v685_v17, %v688_v2 }
 0x19a   :  { %v708_v18 = vsel %vm698_vm8, %v694_v14, 1326507024  ;;  %v325_v15 = vshrl.u32 %v307_v57, %v323_v7  ;;  %v328_v47 = vadd.s32 127, %v327_v62  ;;  %v706_v24 = vsel %vm696_vm5, %v703_v42, %v705_v5 }
 0x19b   :  { %v709_v50 = vsel %vm697_vm6, %v691_v35, %v708_v18  ;;  %v2172_v26 = vmin.u32 %v523_v59, %v3288_v3  ;;  %v3303_v53 = vmul.u32.u64.low %v3258_v10, %v706_v24  ;;  %v3304_v20 = vmul.u32.u64.high %v3258_v10, %v706_v24, %v3303_v53 }
 0x19c   :  { %v710_v6 = vsel %vm696_vm5, %v707_v58, %v709_v50  ;;  %v326_v61 = vor.u32 %v325_v15, %v324_v52  ;;  %v329_v32 = vshll.u32 %v328_v47, 23  ;;  %vm3312_vm9 = vcmp.le.f32.partialorder %v251_v38, 0.7853982 }
 0x19d   :  { %v3307_v30 = vmul.u32.u64.low %v3258_v10, %v710_v6  ;;  %v3308_v43 = vmul.u32.u64.high %v3258_v10, %v710_v6, %v3307_v30  ;;  %v525_v44 = vclz %v2172_v26  ;;  %v2187_v17 = vadd.s32 4294967169, %v873_v48 }
 0x19e   :  { %v877_v19 = vor.u32 8388608, %v3267_v27  ;;  %v330_v54 = vor.u32 4788187, %v329_v32  ;;  %v513_v2 = vadd.s32 %v3236_v11, %v3245_v39  ;;  %v718_v35 = vmul.u32 %v3258_v10, %v702_v1 }
 0x19f   :  { %v338_v14 = vsel %vm253_vm4, %v337_v8, %v3233_v9  ;;  %v333_v38 = vcvt.s32.f32 %v326_v61  ;;  %v2173_v45 = vadd.s32 4294967294, %v525_v44  ;;  %v721_v0 = vadd.s32 1, %v3304_v20 }
 0x1a0   :  { %v879_v60 = vadd.s32 1, %v2187_v17  ;;  %v331_v48 = vand.u32 2147483647, %v330_v54  ;;  %vm720_vm7 = vc.u32 %v3308_v43, %v3303_v53  ;;  %v3327_v27 = vshll.u32 %v877_v19, 8 }
 0x1a1   :  { %v543_v11 = vsub.s32 4, %v3281_v55  ;;  %vm2174_vm10 = vcmp.lt.s32.totalorder %v2173_v45, 0  ;;  %v722_v39 = vsel %vm720_vm7, %v721_v0, %v3304_v20  ;;  %v340_v10 = vsel %vm3312_vm9, 0, %v338_v14 }
 0x1a2   :  { %vm880_vm11 = vcmp.gt.s32.totalorder %v879_v60, 0  ;;  %v334_v9 = vmul.f32 %v333_v38, %v331_v48  ;;  %v528_v8 = vsel %vm2174_vm10, 0, %v2173_v45  ;;  %v723_v42 = vadd.s32 %v722_v39, %v718_v35  ;;  %v3369_v38 = vpop.permute.xlu0 %1270 }
 0x1a3   :  { %v881_v13 = vsel %vm880_vm11, %v879_v60, 0  ;;  %v529_v21 = vsub.s32 32, %v528_v8  ;;  %v533_v36 = vsub.s32 4294967266, %v528_v8  ;;  %v3334_v7 = vadd.s32 %v3303_v53, %v3308_v43 }
 0x1a4   :  { %v3336_v52 = vshrl.u32 %v881_v13, 5  ;;  %v335_v62 = vxor.u32 2147483648, %v334_v9  ;;  %v724_v1 = vadd.s32 536870912, %v723_v42  ;;  %v883_v59 = vand.u32 31, %v881_v13 }
 0x1a5   :  { %v3338_v5 = vand.u32 3, %v340_v10  ;;  %v530_v58 = vshll.u32 %v3288_v3, %v528_v8  ;;  %v531_v18 = vshrl.u32 %v513_v2, %v529_v21  ;;  %v534_v15 = vadd.s32 127, %v533_v36 }
 0x1a6   :  { %vm901_vm12 = vcmp.lt.s32.totalorder %v3336_v52, 1  ;;  %v336_v47 = vsel %vm253_vm4, %v335_v62, %v334_v9  ;;  %v3344_v24 = vshrl.u32 %v724_v1, 30  ;;  %v884_v50 = vsub.s32 32, %v883_v59 }
 0x1a7   :  { %v886_v26 = vshll.u32 %v2437_v23, %v883_v59  ;;  %v339_v6 = vsel %vm3312_vm9, %v3154_v22, %v336_v47  ;;  %v532_v53 = vor.u32 %v531_v18, %v530_v58  ;;  %v535_v20 = vshll.u32 %v534_v15, 23  ;;  %v1257_v15 = vpop.permute.xlu0 %1256 }
 0x1a8   :  { %v889_v3 = vshll.u32 %v2438_v25, %v883_v59  ;;  %vm902_vm15 = vcmp.lt.s32.totalorder %v3336_v52, 2  ;;  %2344 = vcosq.f32 %v339_v6  ;;  %vm459_vm13 = vcmp.lt.s32.totalorder %v3161_v12, 0 }
 0x1a9   :  { %v726_v61 = vshll.u32 %v3344_v24, 30  ;;  %v885_v32 = vshrl.u32 %v2437_v23, %v884_v50  ;;  %v887_v30 = vshrl.u32 %v2438_v25, %v884_v50  ;;  %2346 = vsinq.f32 %v339_v6 }
 0x1aa   :  { %vm3358_vm3 = vcmp.le.f32.partialorder %v457_v63, 0.7853982  ;;  %v536_v57 = vor.u32 4788187, %v535_v20  ;;  %v539_v44 = vcvt.s32.f32 %v532_v53  ;;  %v890_v17 = vshrl.u32 %v2439_v28, %v884_v50 }
 0x1ab   :  { %v3363_v19 = vsub.s32 %v723_v42, %v726_v61  ;;  %v888_v54 = vor.u32 %v887_v30, %v886_v26  ;;  %v892_v2 = vshll.u32 %v2439_v28, %v883_v59  ;;  %v893_v23 = vshrl.u32 %v2440_v31, %v884_v50 }
 0x1ac   :  { %v537_v35 = vand.u32 2147483647, %v536_v57  ;;  %v891_v25 = vor.u32 %v890_v17, %v889_v3  ;;  %v895_v14 = vshll.u32 %v2440_v31, %v883_v59  ;;  %v896_v63 = vshrl.u32 %v2441_v34, %v884_v50 }
 0x1ad   :  { %v729_v45 = vsub.s32 0, %v3363_v19  ;;  %v894_v0 = vor.u32 %v893_v23, %v892_v2  ;;  %v898_v60 = vshll.u32 %v2441_v34, %v883_v59  ;;  %v899_v48 = vshrl.u32 %v2442_v37, %v884_v50 }
 0x1ae   :  { %v540_v39 = vmul.f32 %v539_v44, %v537_v35  ;;  %v897_v10 = vor.u32 %v896_v63, %v895_v14  ;;  %vm903_vm4 = vcmp.lt.s32.totalorder %v3336_v52, 3  ;;  %vm904_vm5 = vcmp.lt.s32.totalorder %v3336_v52, 4  ;;  %v1261_v63 = vpop.permute.xlu0 %1260 }
 0x1af   :  { %v2180_v28 = vmin.u32 %v729_v45, %v3363_v19  ;;  %v900_v31 = vor.u32 %v899_v48, %v898_v60  ;;  %v905_v9 = vsel %vm901_vm12, %v885_v32, %v888_v54  ;;  %v906_v8 = vsel %vm904_vm5, %v894_v0, 2102212464 }
 0x1b0   :  { %v541_v42 = vxor.u32 2147483648, %v540_v39  ;;  %v907_v13 = vsel %vm903_vm4, %v891_v25, %v906_v8  ;;  %v909_v34 = vsel %vm901_vm12, %v888_v54, %v891_v25  ;;  %v910_v37 = vsel %vm904_vm5, %v897_v10, 920167782 }
 0x1b1   :  { %v731_v21 = vclz %v2180_v28  ;;  %v908_v36 = vsel %vm902_vm15, %v905_v9, %v907_v13  ;;  %v911_v62 = vsel %vm903_vm4, %v894_v0, %v910_v37  ;;  %v913_v1 = vsel %vm901_vm12, %v891_v25, %v894_v0 }
 0x1b2   :  { %v542_v59 = vsel %vm459_vm13, %v541_v42, %v540_v39  ;;  %v912_v58 = vsel %vm902_vm15, %v909_v34, %v911_v62  ;;  %v914_v18 = vsel %vm904_vm5, %v900_v31, 1326507024  ;;  %vm345_vm6 = vcmp.lt.s32.totalorder %v3338_v5, 2  ;;  %v2345_v47 = vpop.eup %2344  ;;  %v1265_v34 = vpop.permute.xlu0 %1264 }
 0x1b3   :  { %v545_v50 = vsel %vm3358_vm3, %v3161_v12, %v542_v59  ;;  %v2181_v26 = vadd.s32 4294967294, %v731_v21  ;;  %v915_v6 = vsel %vm903_vm4, %v897_v10, %v914_v18  ;;  %v924_v53 = vmul.u32 %v3327_v27, %v908_v36  ;;  %v2347_v20 = vpop.eup %2346 }
 0x1b4   :  { %2348 = vcosq.f32 %v545_v50  ;;  %v916_v3 = vsel %vm902_vm15, %v913_v1, %v915_v6  ;;  %v3403_v61 = vmul.u32.u64.low %v3327_v27, %v912_v58  ;;  %v3404_v32 = vmul.u32.u64.high %v3327_v27, %v912_v58, %v3403_v61 }
 0x1b5   :  { %2350 = vsinq.f32 %v545_v50  ;;  %vm2182_vm8 = vcmp.lt.s32.totalorder %v2181_v26, 0  ;;  %v3408_v30 = vmul.u32.u64.low %v3327_v27, %v916_v3  ;;  %v3409_v57 = vmul.u32.u64.high %v3327_v27, %v916_v3, %v3408_v30 }
 0x1b6   :  { %v734_v44 = vsel %vm2182_vm8, 0, %v2181_v26  ;;  %vm346_vm2 = vcmp.eq.s32.totalorder %v3338_v5, 0  ;;  %v347_v17 = vxor.u32 2147483648, %v2347_v20  ;;  %v350_v54 = vxor.u32 2147483648, %v2345_v47 }
 0x1b7   :  { %v735_v2 = vsub.s32 32, %v734_v44  ;;  %v739_v23 = vsub.s32 4294967266, %v734_v44  ;;  %vm349_vm9 = vcmp.eq.s32.totalorder %v3338_v5, 2  ;;  %v544_v52 = vsel %vm459_vm13, %v543_v11, %v3281_v55  ;;  %v1234_v5 = vld [vmem:[%s3866_s0 + $0x10] sm:$0xff] }
 0x1b8   :  { %v927_v35 = vadd.s32 1, %v3404_v32  ;;  %v348_v25 = vsel %vm346_vm2, %v2345_v47, %v347_v17  ;;  %v351_v27 = vsel %vm349_vm9, %v350_v54, %v2347_v20  ;;  %v546_v14 = vsel %vm3358_vm3, 0, %v544_v52 }
 0x1b9   :  { %v736_v45 = vshll.u32 %v3363_v19, %v734_v44  ;;  %v737_v0 = vshrl.u32 %v3334_v7, %v735_v2  ;;  %v740_v60 = vadd.s32 127, %v739_v23  ;;  %vm926_vm7 = vc.u32 %v3409_v57, %v3403_v61  ;;  %v1199_v7 = vld [vmem:[%s3864_s2 + $0x18] sm:$0xff]  ;;  %v1238_v44 = vld [vmem:[%s3866_s0 + $0x30] sm:$0xff]  ;;  %v1240_v23 = vld [vmem:[%s3866_s0 + $0x40] sm:$0xff] }
 0x1ba   :  { %v928_v48 = vsel %vm926_vm7, %v927_v35, %v3404_v32  ;;  %vm343_vm10 = vweird.f32 %v3154_v22  ;;  %v352_v55 = vsel %vm345_vm6, %v348_v25, %v351_v27  ;;  %v550_v11 = vand.u32 3, %v546_v14  ;;  %v1241_v22 = vld [vmem:[%s3866_s0 + $0x48] sm:$0xff] }
 0x1bb   :  { %v738_v39 = vor.u32 %v737_v0, %v736_v45  ;;  %v741_v43 = vshll.u32 %v740_v60, 23  ;;  %v929_v10 = vadd.s32 %v928_v48, %v924_v53  ;;  %v353_v28 = vsel %vm343_vm10, nan, %v352_v55  ;;  %v1269_v2 = vpop.permute.xlu0 %1268 }
 0x1bc   :  { %v1187_v19 = vmul.f32 %v2776_v51, %v353_v28  ;;  %vm555_vm11 = vcmp.eq.s32.totalorder %v550_v11, 2  ;;  %v1215_v13 = vmul.f32 %v2640_v49, %v1199_v7  ;;  %v2447_v58 = vmov 1966171168  }
 0x1bd   :  { %v742_v31 = vor.u32 4788187, %v741_v43  ;;  %v930_v9 = vadd.s32 536870912, %v929_v10  ;;  %v745_v36 = vcvt.s32.f32 %v738_v39  ;;  %v1451_v18 = vunpack.c.l.s4 %v2447_v58 }
 0x1be   :  { %v2349_v8 = vpop.eup %2348  ;;  %v1223_v42 = vadd.f32 %v3253_v46, %v1187_v19  ;;  %v1292_v47 = vsel %vm1282_vm0, %v1241_v22, %v3369_v38  ;;  %v3447_v46 = vsel %vm1282_vm0, %v1234_v5, %v1257_v15  ;;  %vm552_vm12 = vcmp.eq.s32.totalorder %v550_v11, 0  ;;  %v1236_v38 = vld [vmem:[%s3866_s0 + $0x20] sm:$0xff] }
 0x1bf   :  { %v2351_v37 = vpop.eup %2350  ;;  %v743_v21 = vand.u32 2147483647, %v742_v31  ;;  %v3441_v62 = vshrl.u32 %v930_v9, 30  ;;  %v556_v1 = vxor.u32 2147483648, %v2349_v8  ;;  %1303 = vst.msk [vmem:[%s3867_s15 + $0x48] sm:$0xff] %vm1293_vm14, %v1292_v47  ;;  %1296 = vst.msk [vmem:[%s3867_s15 + $0x10] sm:$0xff] %vm1293_vm14, %v3447_v46  ;;  %vm549_vm15 = vweird.f32 %v3161_v12 }
 0x1c0   :  { %1254 = vrot.lane.b32.xlu1 %v1223_v42, %s2444_s24  ;;  %v553_v59 = vxor.u32 2147483648, %v2351_v37  ;;  %vm551_vm13 = vcmp.lt.s32.totalorder %v550_v11, 2  ;;  %v749_v53 = vsub.s32 4, %v3344_v24  ;;  %v1452_v30 = vunpack.c.0.s8 %v1451_v18 }
 0x1c1   :  { %v746_v50 = vmul.f32 %v745_v36, %v743_v21  ;;  %v932_v26 = vshll.u32 %v3441_v62, 30  ;;  %v557_v6 = vsel %vm555_vm11, %v556_v1, %v2351_v37  ;;  %vm3470_vm3 = vcmp.le.f32.partialorder %v663_v29, 0.7853982 }
 0x1c2   :  { %v554_v15 = vsel %vm552_vm12, %v2349_v8, %v553_v59  ;;  %vm665_vm4 = vcmp.lt.s32.totalorder %v3168_v41, 0  ;;  %v3476_v54 = vsel %vm1282_vm0, %v1236_v38, %v1261_v63  ;;  %v1449_v27 = vcombine.high %v1292_v47, %v1292_v47  ;;  %v1201_v38 = vld [vmem:[%s3864_s2 + $0x28] sm:$0xff] }
 0x1c3   :  { %v747_v20 = vxor.u32 2147483648, %v746_v50  ;;  %v933_v3 = vsub.s32 %v929_v10, %v932_v26  ;;  %v558_v32 = vsel %vm551_vm13, %v554_v15, %v557_v6  ;;  %1298 = vst.msk [vmem:[%s3867_s15 + $0x20] sm:$0xff] %vm1293_vm14, %v3476_v54  ;;  %v750_v14 = vsel %vm665_vm4, %v749_v53, %v3344_v24 }
 0x1c4   :  { %v559_v12 = vsel %vm549_vm15, nan, %v558_v32  ;;  %v3492_v63 = vsub.s32 %v1452_v30, %v2605_v16  ;;  %v3495_v45 = vsel %vm1282_vm0, %v1238_v44, %v1265_v34  ;;  %v3503_v48 = vsel %vm1282_vm0, %v1240_v23, %v1269_v2 }
 0x1c5   :  { %v748_v52 = vsel %vm665_vm4, %v747_v20, %v746_v50  ;;  %v935_v35 = vsub.s32 0, %v933_v3  ;;  %v1189_v25 = vmul.f32 %v2776_v51, %v559_v12  ;;  %1300 = vst.msk [vmem:[%s3867_s15 + $0x30] sm:$0xff] %vm1293_vm14, %v3495_v45  ;;  %1302 = vst.msk [vmem:[%s3867_s15 + $0x40] sm:$0xff] %vm1293_vm14, %v3503_v48  ;;  %v752_v39 = vsel %vm3470_vm3, 0, %v750_v14 }
 0x1c6   :  { %v751_v29 = vsel %vm3470_vm3, %v3168_v41, %v748_v52  ;;  %v3512_v55 = vrot.slane %v1292_v47, %v3492_v63  ;;  %v3515_v11 = vrot.slane %v1449_v27, %v3492_v63  ;;  %v756_v7 = vand.u32 3, %v752_v39 }
 0x1c7   :  { %2352 = vcosq.f32 %v751_v29  ;;  %v2188_v0 = vmin.u32 %v935_v35, %v933_v3  ;;  %v1225_v60 = vadd.f32 %v1215_v13, %v1189_v25  ;;  %v925_v22 = vadd.s32 %v3403_v61, %v3409_v57 }
 0x1c8   :  { %2354 = vsinq.f32 %v751_v29  ;;  %v1464_v10 = vcombine.high %v3512_v55, %v3512_v55  ;;  %v1465_v28 = vcombine.high %v3515_v11, %v3515_v11  ;;  %vm761_vm6 = vcmp.eq.s32.totalorder %v756_v7, 2 }
 0x1c9   :  { %v937_v24 = vclz %v2188_v0  ;;  %1258 = vrot.lane.b32.xlu1 %v1225_v60, %s2444_s24  ;;  %vm758_vm8 = vcmp.eq.s32.totalorder %v756_v7, 0  ;;  %vm757_vm2 = vcmp.lt.s32.totalorder %v756_v7, 2  ;;  %vm755_vm9 = vweird.f32 %v3168_v41 }
 0x1ca   :  { %v1486_v19 = vrot.slane %v1464_v10, %v3492_v63  ;;  %v1493_v9 = vrot.slane %v1465_v28, %v3492_v63  ;;  %v1217_v17 = vmul.f32 %v2640_v49, %v1201_v38  ;;  %vm871_vm7 = vcmp.lt.s32.totalorder %v3201_v40, 0 }
 0x1cb   :  { %v2189_v43 = vadd.s32 4294967294, %v937_v24  ;;  %vm870_vm10 = vcmp.le.f32.partialorder %v869_v56, 0.7853982  ;;  %v955_v41 = vsub.s32 4, %v3441_v62  ;;  %v1203_v56 = vld [vmem:[%s3864_s2 + $0x38] sm:$0xff]  ;;  %vm961_vm13 = vweird.f32 %v3201_v40 }
 0x1cc   :  { %v1496_v42 = vcombine.high %v1486_v19, %v1486_v19  ;;  %v1521_v13 = vrot.slane %v1493_v9, %v2623_v33  ;;  %v1497_v34 = vcombine.high %v1493_v9, %v1493_v9  ;;  %v1505_v37 = vrot.slane %v1486_v19, %v2623_v33 }
 0x1cd   :  { %vm2190_vm5 = vcmp.lt.s32.totalorder %v2189_v43, 0  ;;  %v956_v0 = vsel %vm871_vm7, %v955_v41, %v3441_v62  ;;  %v1219_v62 = vmul.f32 %v2640_v49, %v1203_v56  ;;  %v1233_v49 = vld [vmem:[%s3866_s0 + $0x8] sm:$0xff]  ;;  %vm1612_vm3 = vcmask 1041409  }
 0x1ce   :  { %v940_v31 = vsel %vm2190_vm5, 0, %v2189_v43  ;;  %v1513_v47 = vrot.slane %v1496_v42, %v2623_v33  ;;  %v3531_v50 = vmul.f32 %v1521_v13, %v3495_v45  ;;  %v1529_v61 = vrot.slane %v1497_v34, %v2623_v33 }
 0x1cf   :  { %v941_v5 = vsub.s32 32, %v940_v31  ;;  %v945_v8 = vsub.s32 4294967266, %v940_v31  ;;  %v942_v36 = vshll.u32 %v933_v3, %v940_v31  ;;  %v3538_v15 = vmul.f32 %v1505_v37, %v3447_v46 }
 0x1d0   :  { %v3541_v20 = vmul.f32 %v1513_v47, %v3476_v54  ;;  %v3544_v3 = vmul.f32 %v1529_v61, %v3503_v48  ;;  %v958_v60 = vsel %vm870_vm10, 0, %v956_v0  ;;  %v1561_v38 = vsel %vm1293_vm14, %v3531_v50, 0.0 }
 0x1d1   :  { %v2353_v21 = vpop.eup %2352  ;;  %v943_v1 = vshrl.u32 %v925_v22, %v941_v5  ;;  %v946_v59 = vadd.s32 127, %v945_v8  ;;  %v962_v24 = vand.u32 3, %v958_v60  ;;  %v2199_v8 = vld [vmem:[%s3868_s8] ss:$0 sm:$0xff]  ;;  %v1479_v50 = vrot.slane %v3515_v11, %v3492_v63 }
 0x1d2   :  { %v2355_v58 = vpop.eup %2354  ;;  %v762_v18 = vxor.u32 2147483648, %v2353_v21  ;;  %vm1614_vm4 = vcmask 1042434   ;;  %vm1616_vm5 = vcmask 1043459  }
 0x1d3   :  { %v944_v57 = vor.u32 %v943_v1, %v942_v36  ;;  %v947_v26 = vshll.u32 %v946_v59, 23  ;;  %v759_v6 = vxor.u32 2147483648, %v2355_v58  ;;  %vm967_vm11 = vcmp.eq.s32.totalorder %v962_v24, 2 }
 0x1d4   :  { %v763_v53 = vsel %vm761_vm6, %v762_v18, %v2355_v58  ;;  %vm964_vm12 = vcmp.eq.s32.totalorder %v962_v24, 0  ;;  %vm963_vm15 = vcmp.lt.s32.totalorder %v962_v24, 2  ;;  %v1235_v58 = vld [vmem:[%s3866_s0 + $0x18] sm:$0xff]  ;;  %vm1618_vm6 = vcmask 1044484  }
 0x1d5   :  { %v948_v32 = vor.u32 4788187, %v947_v26  ;;  %v760_v30 = vsel %vm758_vm8, %v2353_v21, %v759_v6  ;;  %v951_v2 = vcvt.s32.f32 %v944_v57  ;;  %v1555_v6 = vsel %vm1293_vm14, %v3541_v20, 0.0 }
 0x1d6   :  { %v764_v44 = vsel %vm757_vm2, %v760_v30, %v763_v53  ;;  %v1567_v53 = vsel %vm1293_vm14, %v3544_v3, 0.0  ;;  %v1517_v20 = vrot.slane %v1479_v50, %v2623_v33  ;;  %v1549_v3 = vsel %vm1293_vm14, %v3538_v15, 0.0 }
 0x1d7   :  { %v949_v12 = vand.u32 2147483647, %v948_v32  ;;  %v765_v23 = vsel %vm755_vm9, nan, %v764_v44  ;;  %v1237_v32 = vld [vmem:[%s3866_s0 + $0x28] sm:$0xff]  ;;  %vm1620_vm8 = vcmask 1045509   ;;  %vm1622_vm2 = vcmask 1046534  }
 0x1d8   :  { %v1191_v52 = vmul.f32 %v2776_v51, %v765_v23  ;;  %v1239_v23 = vld [vmem:[%s3866_s0 + $0x38] sm:$0xff]  ;;  %vm1624_vm9 = vcmask 1047559  }
 0x1d9   :  { %v952_v35 = vmul.f32 %v951_v2, %v949_v12  ;;  %v1495_v2 = vcombine.high %v1479_v50, %v1479_v50 }
 0x1da   :  { %v1227_v25 = vadd.f32 %v1217_v17, %v1191_v52 }
 0x1db   :  { %v953_v27 = vxor.u32 2147483648, %v952_v35 }
 0x1dc   :  { %1262 = vrot.lane.b32.xlu1 %v1227_v25, %s2444_s24  ;;  %v3638_v25 = vld [vmem:[%s3869_s14] sm:$0xff] }
 0x1dd   :  { %v954_v29 = vsel %vm871_vm7, %v953_v27, %v952_v35  ;;  %v1525_v35 = vrot.slane %v1495_v2, %v2623_v33  ;;  %vm1627_vm7 = vcmask 64512  }
 0x1de   :  { %v957_v14 = vsel %vm870_vm10, %v3201_v40, %v954_v29  ;;  %v1472_v40 = vrot.slane %v3512_v55, %v3492_v63 }
 0x1df   :  { %2356 = vcosq.f32 %v957_v14 }
 0x1e0   :  { %2358 = vsinq.f32 %v957_v14  ;;  %v1494_v59 = vcombine.high %v1472_v40, %v1472_v40 }
 0x1e2   :  { %v1509_v47 = vrot.slane %v1494_v59, %v2623_v33 }
 0x1e9   :  { %v2357_v39 = vpop.eup %2356 }
 0x1ea   :  { %v2359_v43 = vpop.eup %2358  ;;  %v968_v10 = vxor.u32 2147483648, %v2357_v39 }
 0x1eb   :  { %v965_v28 = vxor.u32 2147483648, %v2359_v43 }
 0x1ec   :  { %v969_v7 = vsel %vm967_vm11, %v968_v10, %v2359_v43 }
 0x1ed   :  { %v966_v19 = vsel %vm964_vm12, %v2357_v39, %v965_v28  ;;  %v3647_v39 = vand.u32 127, %v1181_v4 }
 0x1ee   :  { %v970_v31 = vsel %vm963_vm15, %v966_v19, %v969_v7 }
 0x1ef   :  { %v971_v9 = vsel %vm961_vm13, nan, %v970_v31  ;;  %v3651_v28 = vsub.s32 %v3647_v39, %v2605_v16 }
 0x1f0   :  { %v1193_v22 = vmul.f32 %v2776_v51, %v971_v9  ;;  %v1501_v51 = vrot.slane %v1472_v40, %v2623_v33 }
 0x1f2   :  { %v1229_v5 = vadd.f32 %v1219_v62, %v1193_v22 }
 0x1f4   :  { %1266 = vrot.lane.b32.xlu1 %v1229_v5, %s2444_s24 }
 0x228   :  { %v1398_v42 = vpop.f32.mrb[0].mxu0 }
 0x229   :  { %v1399_v13 = vadd.f32 %v2199_v8, %v1398_v42  ;;  %v2246_v34 = vpop.f32.mrb[1].mxu0 }
 0x22b   :  { %2360 = vtanh.f32 %v1399_v13  ;;  %v2201_v27 = vmul.f32 -1.442695, %v1399_v13 }
 0x22d   :  { %2362 = vpow2.f32 %v2201_v27 }
 0x232   :  { %v1255_v37 = vpop.permute.xlu1 %1254 }
 0x233   :  { %v3573_v21 = vsel %vm1282_vm0, %v1233_v49, %v1255_v37 }
 0x234   :  { %1295 = vst.msk [vmem:[%s3867_s15 + $0x8] sm:$0xff] %vm1293_vm14, %v3573_v21  ;;  %v1538_v36 = vmul.f32 %v1501_v51, %v3573_v21 }
 0x235   :  { %v2361_v1 = vpop.eup %2360 }
 0x236   :  { %v1546_v55 = vsel %vm1293_vm14, %v1538_v36, 0.0  ;;  %1415 = vrot.lane.b32.xlu1 %v2361_v1, %s2448_s28 }
 0x237   :  { %1547 = vadd.xlane.f32.xlu0 %v1546_v55  ;;  %v2363_v29 = vpop.eup %2362 }
 0x238   :  { %v1405_v41 = vadd.f32 1.0, %v2363_v29 }
 0x23a   :  { %2364 = vrcp.f32 %v1405_v41 }
 0x23b   :  { %v1259_v18 = vpop.permute.xlu1 %1258 }
 0x23c   :  { %v3588_v61 = vsel %vm1282_vm0, %v1235_v58, %v1259_v18 }
 0x23d   :  { %1297 = vst.msk [vmem:[%s3867_s15 + $0x18] sm:$0xff] %vm1293_vm14, %v3588_v61  ;;  %v1540_v57 = vmul.f32 %v1509_v47, %v3588_v61 }
 0x23f   :  { %v1552_v26 = vsel %vm1293_vm14, %v1540_v57, 0.0 }
 0x240   :  { %1553 = vadd.xlane.f32.xlu0 %v1552_v26 }
 0x244   :  { %1556 = vadd.xlane.f32.xlu0 %v1555_v6  ;;  %v3642_v14 = vpop.eup %2364  ;;  %v1442_v6 = vld [vmem:[%s3870_s6] sm:$0xff] }
 0x248   :  { %1562 = vadd.xlane.f32.xlu0 %v1561_v38  ;;  %v22_v38 = vstv %s3871_s12 }
 0x249   :  { %23 = vst [vmem:[#allocation2] sm:$0x1] %v22_v38 }
 0x24c   :  { %1568 = vadd.xlane.f32.xlu0 %v1567_v53  ;;  %v3688_v53 = vsub.s32 1, %v2605_v16 }
 0x24e   :  { %v1263_v30 = vpop.permute.xlu1 %1262 }
 0x24f   :  { %v3607_v44 = vsel %vm1282_vm0, %v1237_v32, %v1263_v30  ;;  %v3691_v32 = vsub.s32 5, %v2605_v16  ;;  %v3694_v30 = vsub.s32 2, %v2605_v16 }
 0x250   :  { %1299 = vst.msk [vmem:[%s3867_s15 + $0x28] sm:$0xff] %vm1293_vm14, %v3607_v44  ;;  %v1542_v17 = vmul.f32 %v1517_v20, %v3607_v44 }
 0x252   :  { %v1558_v12 = vsel %vm1293_vm14, %v1542_v17, 0.0 }
 0x25a   :  { %1550 = vadd.xlane.f32.xlu1 %v1549_v3 }
 0x25e   :  { %1559 = vadd.xlane.f32.xlu1 %v1558_v12  ;;  %v3700_v12 = vsub.s32 3, %v2605_v16 }
 0x266   :  { %v1267_v52 = vpop.permute.xlu1 %1266 }
 0x267   :  { %v3626_v63 = vsel %vm1282_vm0, %v1239_v23, %v1267_v52 }
 0x268   :  { %1301 = vst.msk [vmem:[%s3867_s15 + $0x38] sm:$0xff] %vm1293_vm14, %v3626_v63  ;;  %v1544_v11 = vmul.f32 %v1525_v35, %v3626_v63 }
 0x26a   :  { %v1564_v15 = vsel %vm1293_vm14, %v1544_v11, 0.0 }
 0x26b   :  { %1565 = vadd.xlane.f32.xlu1 %v1564_v15 }
 0x27c   :  { %1410 = vrot.lane.b32.xlu1 %v3638_v25, %s2444_s24 }
 0x2a8   :  { %v1416_v0 = vpop.permute.xlu1 %1415 }
 0x2a9   :  { %v1418_v60 = vmul.f32 %v3642_v14, %v1416_v0  ;;  %v3705_v0 = vsub.s32 4, %v2605_v16 }
 0x2ab   :  { %1420 = vrot.lane.b32.xlu0 %v1418_v60, %s2444_s24 }
 0x2c4   :  { %v1548_v24 = vpop.xlane.xlu0 %1547 }
 0x2c5   :  { %v1583_v19 = vrot.slane %v1548_v24, %v3651_v28 }
 0x2cd   :  { %v1554_v43 = vpop.xlane.xlu0 %1553 }
 0x2ce   :  { %v1591_v62 = vrot.slane %v1554_v43, %v3651_v28 }
 0x2d1   :  { %v1557_v7 = vpop.xlane.xlu0 %1556 }
 0x2d2   :  { %v1595_v5 = vrot.slane %v1557_v7, %v3651_v28 }
 0x2d5   :  { %v1563_v4 = vpop.xlane.xlu0 %1562 }
 0x2d6   :  { %v1603_v40 = vrot.slane %v1563_v4, %v3651_v28 }
 0x2d9   :  { %v3664_v13 = vpop.xlane.xlu0 %1568 }
 0x2da   :  { %v1611_v51 = vrot.slane %v3664_v13, %v3651_v28 }
 0x2e7   :  { %v1551_v10 = vpop.xlane.xlu1 %1550 }
 0x2e8   :  { %v1587_v56 = vrot.slane %v1551_v10, %v3651_v28 }
 0x2ea   :  { %v1613_v31 = vsel %vm1612_vm3, %v1587_v56, %v1583_v19  ;;  %v3708_v19 = vsub.s32 6, %v2605_v16 }
 0x2eb   :  { %v3657_v9 = vpop.xlane.xlu1 %1559  ;;  %v1615_v22 = vsel %vm1614_vm4, %v1591_v62, %v1613_v31 }
 0x2ec   :  { %v1599_v8 = vrot.slane %v3657_v9, %v3651_v28  ;;  %v1617_v42 = vsel %vm1616_vm5, %v1595_v5, %v1615_v22 }
 0x2ee   :  { %v1619_v34 = vsel %vm1618_vm6, %v1599_v8, %v1617_v42 }
 0x2ef   :  { %v1621_v36 = vsel %vm1620_vm8, %v1603_v40, %v1619_v34 }
 0x2f8   :  { %v1566_v49 = vpop.xlane.xlu1 %1565 }
 0x2f9   :  { %v1607_v37 = vrot.slane %v1566_v49, %v3651_v28 }
 0x2fb   :  { %v1623_v1 = vsel %vm1622_vm2, %v1607_v37, %v1621_v36 }
 0x2fc   :  { %v1625_v55 = vsel %vm1624_vm9, %v1611_v51, %v1623_v1  ;;  %v1411_v58 = vpop.permute.xlu1 %1410 }
 0x2fd   :  { %v1628_v59 = vsel %vm1627_vm7, %v1625_v55, -inf  ;;  %v1413_v18 = vmul.f32 %v3642_v14, %v1411_v58 }
 0x2fe   :  { %1629 = vmax.xlane.f32.xlu1 %v1628_v59  ;;  %v2202_v59 = vld [vmem:[%s3872_s10] ss:$0 sm:$0xff] }
 0x2ff   :  { %v1836_v38 = vmul.f32 %v2202_v59, %v3447_v46  ;;  %v3762_v46 = vld [vmem:[%s3873_s9] sm:$0xff]  ;;  %s2449_s9 = smov 96  }
 0x300   :  { %vm1431_vm10 = vcmp.ne.s32.totalorder %v3762_v46, 0 }
 0x31d   :  { %v1421_v47 = vpop.permute.xlu0 %1420 }
 0x31e   :  { %v3676_v57 = vadd.f32 %v1421_v47, %v1413_v18  ;;  %v1839_v18 = vmul.f32 %v2202_v59, %v3607_v44  ;;  %v1838_v44 = vmul.f32 %v2202_v59, %v3476_v54  ;;  %v2203_v54 = vld [vmem:[%s3874_s11] ss:$0 sm:$0xff]  ;;  %s2450_s11 = smov 80  }
 0x320   :  { %2366 = vtanh.f32 %v3676_v57  ;;  %v1855_v47 = vsel %vm1293_vm14, %v1839_v18, 0.0 }
 0x32a   :  { %v2367_v26 = vpop.eup %2366 }
 0x32b   :  { %1426 = vrot.lane.b32.xlu0 %v2367_v26, %s2448_s28  ;;  %v1841_v26 = vmul.f32 %v2202_v59, %v3626_v63  ;;  %v1852_v63 = vsel %vm1293_vm14, %v1838_v44, 0.0 }
 0x32f   :  { %1444 = vrot.lane.b32.xlu0 %v1442_v6, %s2444_s24  ;;  %v1861_v6 = vsel %vm1293_vm14, %v1841_v26, 0.0 }
 0x38b   :  { %v1630_v50 = vpop.xlane.xlu1 %1629 }
 0x38c   :  { %v1635_v20 = vrot.slane %v1630_v50, %v2623_v33  ;;  %v1639_v3 = vrot.slane %v1630_v50, %v3688_v53  ;;  %v1655_v17 = vrot.slane %v1630_v50, %v3691_v32  ;;  %v1643_v2 = vrot.slane %v1630_v50, %v3694_v30 }
 0x38d   :  { %v1647_v15 = vrot.slane %v1630_v50, %v3700_v12  ;;  %v1659_v62 = vrot.slane %v1630_v50, %v3708_v19 }
 0x38e   :  { %v1672_v23 = vsub.f32 %v1548_v24, %v1635_v20  ;;  %v1673_v52 = vsub.f32 %v1551_v10, %v1639_v3  ;;  %v1677_v35 = vsub.f32 %v1563_v4, %v1655_v17  ;;  %v1674_v27 = vsub.f32 %v1554_v43, %v1643_v2  ;;  %v2204_v3 = vld [vmem:[#allocation2] ss:$0 sm:$0xff] }
 0x38f   :  { %v1675_v60 = vsub.f32 %v1557_v7, %v1647_v15  ;;  %v1651_v24 = vrot.slane %v1630_v50, %v3705_v0  ;;  %v3715_v43 = vsub.s32 7, %v2605_v16  ;;  %v1678_v8 = vsub.f32 %v1566_v49, %v1659_v62 }
 0x390   :  { %v1680_v11 = vmul.f32 1.442695, %v1672_v23  ;;  %v1682_v29 = vmul.f32 1.442695, %v1673_v52  ;;  %v1690_v41 = vmul.f32 1.442695, %v1677_v35  ;;  %v1837_v20 = vmul.f32 %v2202_v59, %v3588_v61 }
 0x391   :  { %v1684_v56 = vmul.f32 1.442695, %v1674_v27  ;;  %v1686_v10 = vmul.f32 1.442695, %v1675_v60  ;;  %v1676_v7 = vsub.f32 %v3657_v9, %v1651_v24  ;;  %v1663_v5 = vrot.slane %v1630_v50, %v3715_v43 }
 0x392   :  { %2368 = vpow2.f32 %v1680_v11  ;;  %v1692_v9 = vmul.f32 1.442695, %v1678_v8  ;;  %v1846_v50 = vsel %vm1293_vm14, %v1836_v38, 0.0  ;;  %v2434_v11 = vld [vmem:[%s3860_s13] sm:$0xff] }
 0x393   :  { %2370 = vpow2.f32 %v1682_v29  ;;  %v1688_v42 = vmul.f32 1.442695, %v1676_v7  ;;  %v1679_v40 = vsub.f32 %v3664_v13, %v1663_v5  ;;  %v1840_v7 = vmul.f32 %v2202_v59, %v3495_v45 }
 0x394   :  { %2372 = vpow2.f32 %v1690_v41 }
 0x395   :  { %2374 = vpow2.f32 %v1684_v56  ;;  %v1694_v36 = vmul.f32 1.442695, %v1679_v40 }
 0x396   :  { %2376 = vpow2.f32 %v1686_v10 }
 0x397   :  { %2378 = vpow2.f32 %v1688_v42 }
 0x398   :  { %2380 = vpow2.f32 %v1692_v9 }
 0x399   :  { %2382 = vpow2.f32 %v1694_v36  ;;  %v1858_v36 = vsel %vm1293_vm14, %v1840_v7, 0.0 }
 0x39c   :  { %v3711_v31 = vpop.eup %2368 }
 0x39d   :  { %1705 = vperm.xlu0 %2318, %v3711_v31   ;;  %v3719_v4 = vpop.eup %2370  ;;  %v1427_v51 = vpop.permute.xlu0 %1426 }
 0x39e   :  { %v3721_v22 = vpop.eup %2372  ;;  %v1429_v49 = vmul.f32 %v3642_v14, %v1427_v51  ;;  %v1835_v14 = vmul.f32 %v2202_v59, %v3573_v21  ;;  %v1849_v21 = vsel %vm1293_vm14, %v1837_v20, 0.0 }
 0x39f   :  { %1720 = vperm.xlu1 %2319, %v3721_v22   ;;  %v3726_v34 = vpop.eup %2374 }
 0x3a0   :  { %v3730_v37 = vpop.eup %2376  ;;  %v1843_v58 = vsel %vm1293_vm14, %v1835_v14, 0.0 }
 0x3a1   :  { %1708 = vperm.xlu0 %2318, %v3719_v4   ;;  %v3735_v1 = vpop.eup %2378  ;;  %v1445_v17 = vpop.permute.xlu0 %1444 }
 0x3a2   :  { %v3738_v55 = vpop.eup %2380 }
 0x3a3   :  { %v3741_v13 = vpop.eup %2382 }
 0x3a5   :  { %1711 = vperm.xlu0 %2318, %v3726_v34  }
 0x3a9   :  { %1714 = vperm.xlu0 %2318, %v3730_v37  }
 0x3ad   :  { %1433 = vrot.lane.b32.xlu0 %v1429_v49, %s2444_s24  ;;  %v1842_v49 = vmul.f32 %v2202_v59, %v3503_v48 }
 0x3af   :  { %v1864_v26 = vsel %vm1293_vm14, %v1842_v49, 0.0  ;;  %vm2146_vm14 = vcmask 982016  }
 0x3b1   :  { %1717 = vperm.xlu0 %2318, %v3735_v1  }
 0x3b5   :  { %1723 = vperm.xlu0 %2318, %v3738_v55  }
 0x3b9   :  { %1726 = vperm.xlu0 %2318, %v3741_v13  }
 0x3c3   :  { %1844 = vadd.xlane.f32.xlu1 %v1843_v58 }
 0x3c7   :  { %1856 = vadd.xlane.f32.xlu1 %v1855_v47 }
 0x3cb   :  { %1862 = vadd.xlane.f32.xlu1 %v1861_v6 }
 0x3d8   :  { %1847 = vadd.xlane.f32.xlu0 %v1846_v50 }
 0x3dc   :  { %1850 = vadd.xlane.f32.xlu0 %v1849_v21  ;;  %1934 = vperm.xlu1 %2319, %v2204_v3  }
 0x3e0   :  { %1853 = vadd.xlane.f32.xlu0 %v1852_v63 }
 0x41c   :  { %v1706_v2 = vpop.permute.xlu0 %1705 }
 0x41d   :  { %v1731_v24 = vrot.slane %v1706_v2, %v3651_v28 }
 0x41e   :  { %v1721_v42 = vpop.permute.xlu1 %1720 }
 0x41f   :  { %v1751_v45 = vrot.slane %v1721_v42, %v3651_v28 }
 0x420   :  { %v1709_v23 = vpop.permute.xlu0 %1708 }
 0x421   :  { %v1735_v29 = vrot.slane %v1709_v23, %v3651_v28 }
 0x423   :  { %v1760_v8 = vsel %vm1612_vm3, %v1735_v29, %v1731_v24 }
 0x424   :  { %v1712_v52 = vpop.permute.xlu0 %1711 }
 0x425   :  { %v1739_v60 = vrot.slane %v1712_v52, %v3651_v28 }
 0x427   :  { %v1761_v40 = vsel %vm1614_vm4, %v1739_v60, %v1760_v8 }
 0x428   :  { %v1715_v61 = vpop.permute.xlu0 %1714 }
 0x429   :  { %v1743_v10 = vrot.slane %v1715_v61, %v3651_v28 }
 0x42b   :  { %v1762_v51 = vsel %vm1616_vm5, %v1743_v10, %v1761_v40 }
 0x42c   :  { %v1434_v35 = vpop.permute.xlu0 %1433 }
 0x42d   :  { %v1436_v15 = vsel %vm1431_vm10, %v2434_v11, %v1434_v35 }
 0x42e   :  { %v3774_v27 = vsel %vm1282_vm0, %v1436_v15, %v1445_v17  ;;  %vm2144_vm0 = vcmask 916480  }
 0x42f   :  { %v1874_v41 = vmul.f32 %v2203_v54, %v3774_v27 }
 0x430   :  { %v1718_v56 = vpop.permute.xlu0 %1717 }
 0x431   :  { %v1875_v62 = vsel %vm1328_vm1, %v1874_v41, 0.0  ;;  %v1747_v5 = vrot.slane %v1718_v56, %v3651_v28 }
 0x432   :  { %1876 = vadd.xlane.f32.xlu0 %v1875_v62 }
 0x433   :  { %v1763_v14 = vsel %vm1618_vm6, %v1747_v5, %v1762_v51 }
 0x434   :  { %v1724_v9 = vpop.permute.xlu0 %1723  ;;  %v1764_v6 = vsel %vm1620_vm8, %v1751_v45, %v1763_v14 }
 0x435   :  { %v1755_v58 = vrot.slane %v1724_v9, %v3651_v28 }
 0x436   :  { %1859 = vadd.xlane.f32.xlu0 %v1858_v36 }
 0x437   :  { %v1765_v38 = vsel %vm1622_vm2, %v1755_v58, %v1764_v6 }
 0x438   :  { %v1727_v18 = vpop.permute.xlu0 %1726 }
 0x439   :  { %v1759_v47 = vrot.slane %v1727_v18, %v3651_v28 }
 0x43a   :  { %1865 = vadd.xlane.f32.xlu0 %v1864_v26 }
 0x43b   :  { %v1766_v50 = vsel %vm1624_vm9, %v1759_v47, %v1765_v38 }
 0x43c   :  { %v1768_v48 = vsel %vm1627_vm7, %v1766_v50, 0.0 }
 0x43e   :  { %1769 = vadd.xlane.f32.xlu0 %v1768_v48 }
 0x450   :  { %v1845_v20 = vpop.xlane.xlu1 %1844 }
 0x454   :  { %1438 = vrot.lane.b32.xlu0 %v3676_v57, %s2449_s9  ;;  %v1857_v44 = vpop.xlane.xlu1 %1856 }
 0x458   :  { %v1863_v3 = vpop.xlane.xlu1 %1862 }
 0x45c   :  { %v1935_v11 = vpop.permute.xlu1 %1934 }
 0x465   :  { %v1848_v59 = vpop.xlane.xlu0 %1847 }
 0x469   :  { %v1851_v21 = vpop.xlane.xlu0 %1850 }
 0x46d   :  { %v1854_v28 = vpop.xlane.xlu0 %1853 }
 0x4bf   :  { %v1877_v63 = vpop.xlane.xlu0 %1876 }
 0x4c0   :  { %v1882_v17 = vrot.slane %v1877_v63, %v2623_v33  ;;  %v1886_v2 = vrot.slane %v1877_v63, %v3688_v53  ;;  %v1890_v23 = vrot.slane %v1877_v63, %v3694_v30  ;;  %v1894_v57 = vrot.slane %v1877_v63, %v3700_v12 }
 0x4c1   :  { %v1898_v56 = vrot.slane %v1877_v63, %v3705_v0  ;;  %v1910_v5 = vrot.slane %v1877_v63, %v3715_v43  ;;  %v1906_v58 = vrot.slane %v1877_v63, %v3708_v19  ;;  %v1902_v18 = vrot.slane %v1877_v63, %v3691_v32 }
 0x4c2   :  { %v1919_v52 = vadd.f32 %v1882_v17, %v1845_v20  ;;  %v1920_v61 = vadd.f32 %v1886_v2, %v1848_v59  ;;  %v1921_v35 = vadd.f32 %v1890_v23, %v1851_v21  ;;  %v1922_v24 = vadd.f32 %v1894_v57, %v1854_v28 }
 0x4c3   :  { %v1860_v54 = vpop.xlane.xlu0 %1859  ;;  %v1923_v42 = vadd.f32 %v1898_v56, %v1857_v44  ;;  %v1925_v6 = vadd.f32 %v1906_v58, %v1863_v3 }
 0x4c4   :  { %v1937_v15 = vadd.f32 %v1935_v11, %v1919_v52  ;;  %v1938_v29 = vadd.f32 %v1935_v11, %v1920_v61  ;;  %v1939_v41 = vadd.f32 %v1935_v11, %v1921_v35  ;;  %v1940_v9 = vadd.f32 %v1935_v11, %v1922_v24 }
 0x4c5   :  { %v1941_v45 = vadd.f32 %v1935_v11, %v1923_v42  ;;  %v1924_v26 = vadd.f32 %v1902_v18, %v1860_v54  ;;  %v1943_v21 = vadd.f32 %v1935_v11, %v1925_v6 }
 0x4c6   :  { %v2205_v10 = vmul.f32 -1.442695, %v1937_v15  ;;  %v2206_v62 = vmul.f32 -1.442695, %v1938_v29  ;;  %v2207_v7 = vmul.f32 -1.442695, %v1939_v41 }
 0x4c7   :  { %v1866_v60 = vpop.xlane.xlu0 %1865  ;;  %v1942_v50 = vadd.f32 %v1935_v11, %v1924_v26  ;;  %v2211_v2 = vmul.f32 -1.442695, %v1943_v21 }
 0x4c8   :  { %2384 = vpow2.f32 %v2205_v10  ;;  %v1926_v51 = vadd.f32 %v1910_v5, %v1866_v60 }
 0x4c9   :  { %2386 = vpow2.f32 %v2206_v62  ;;  %v2210_v28 = vmul.f32 -1.442695, %v1942_v50  ;;  %v2102_v50 = vadd.s32 4294967176, %v3647_v39 }
 0x4ca   :  { %2388 = vpow2.f32 %v2207_v7  ;;  %v1944_v47 = vadd.f32 %v1935_v11, %v1926_v51 }
 0x4cb   :  { %v3805_v8 = vpop.xlane.xlu0 %1769  ;;  %v2105_v21 = vsub.s32 %v2102_v50, %v2605_v16 }
 0x4cc   :  { %v1787_v40 = vrot.slane %v3805_v8, %v3700_v12  ;;  %v1775_v36 = vrot.slane %v3805_v8, %v2623_v33  ;;  %v1791_v49 = vrot.slane %v3805_v8, %v3705_v0  ;;  %v1779_v14 = vrot.slane %v3805_v8, %v3688_v53 }
 0x4cd   :  { %v2208_v12 = vmul.f32 -1.442695, %v1940_v9  ;;  %v1795_v33 = vrot.slane %v3805_v8, %v3691_v32  ;;  %v1783_v0 = vrot.slane %v3805_v8, %v3694_v30  ;;  %v2209_v53 = vmul.f32 -1.442695, %v1941_v45 }
 0x4ce   :  { %2390 = vrcp.f32 %v1787_v40  ;;  %v2212_v38 = vmul.f32 -1.442695, %v1944_v47  ;;  %v1799_v48 = vrot.slane %v3805_v8, %v3708_v19  ;;  %v1803_v61 = vrot.slane %v3805_v8, %v3715_v43 }
 0x4cf   :  { %2392 = vrcp.f32 %v1775_v36 }
 0x4d0   :  { %2394 = vrcp.f32 %v1791_v49 }
 0x4d1   :  { %2396 = vrcp.f32 %v1779_v14  ;;  %v1439_v14 = vpop.permute.xlu0 %1438 }
 0x4d2   :  { %2398 = vpow2.f32 %v2208_v12  ;;  %v2385_v59 = vpop.eup %2384  ;;  %v1441_v58 = vsel %vm1431_vm10, %v3638_v25, %v1439_v14 }
 0x4d3   :  { %2400 = vrcp.f32 %v1795_v33  ;;  %v2387_v20 = vpop.eup %2386  ;;  %v1969_v19 = vadd.f32 1.0, %v2385_v59 }
 0x4d4   :  { %2402 = vrcp.f32 %v1783_v0  ;;  %v2389_v44 = vpop.eup %2388  ;;  %v1970_v63 = vadd.f32 1.0, %v2387_v20  ;;  %v2029_v0 = vadd.s32 4294967184, %v3647_v39 }
 0x4d5   :  { %2404 = vpow2.f32 %v2209_v53  ;;  %v1971_v11 = vadd.f32 1.0, %v2389_v44 }
 0x4d6   :  { %2406 = vpow2.f32 %v2212_v38  ;;  %v2032_v38 = vsub.s32 %v2029_v0, %v2605_v16 }
 0x4d7   :  { %2408 = vrcp.f32 %v1799_v48 }
 0x4d8   :  { %v2391_v32 = vpop.eup %2390  ;;  %2410 = vpow2.f32 %v2210_v28 }
 0x4d9   :  { %v2393_v30 = vpop.eup %2392  ;;  %v1819_v3 = vmul.f32 %v2391_v32, %v3730_v37  ;;  %2412 = vrcp.f32 %v1970_v63 }
 0x4da   :  { %v2395_v17 = vpop.eup %2394  ;;  %v1813_v23 = vmul.f32 %v2393_v30, %v3711_v31  ;;  %2414 = vpow2.f32 %v2211_v2 }
 0x4db   :  { %v2397_v52 = vpop.eup %2396  ;;  %2015 = vperm.xlu0 %2318, %v1819_v3   ;;  %v1821_v54 = vmul.f32 %v2395_v17, %v3735_v1  ;;  %2416 = vrcp.f32 %v1969_v19 }
 0x4dc   :  { %2006 = vperm.xlu1 %2319, %v1813_v23   ;;  %v2399_v35 = vpop.eup %2398  ;;  %v1815_v37 = vmul.f32 %v2397_v52, %v3719_v4  ;;  %2418 = vrcp.f32 %v1803_v61 }
 0x4dd   :  { %v2401_v57 = vpop.eup %2400  ;;  %2420 = vrcp.f32 %v1971_v11  ;;  %v1972_v43 = vadd.f32 1.0, %v2399_v35 }
 0x4de   :  { %v2403_v15 = vpop.eup %2402  ;;  %v1823_v41 = vmul.f32 %v2401_v57, %v3721_v22 }
 0x4df   :  { %2018 = vperm.xlu0 %2318, %v1821_v54   ;;  %v2405_v31 = vpop.eup %2404  ;;  %v1817_v1 = vmul.f32 %v2403_v15, %v3726_v34  ;;  %2422 = vrcp.f32 %v1972_v43 }
 0x4e0   :  { %2009 = vperm.xlu1 %2319, %v1815_v37   ;;  %v2407_v29 = vpop.eup %2406  ;;  %v1973_v4 = vadd.f32 1.0, %v2405_v31 }
 0x4e1   :  { %v2409_v60 = vpop.eup %2408  ;;  %v1976_v56 = vadd.f32 1.0, %v2407_v29 }
 0x4e2   :  { %v1825_v24 = vmul.f32 %v2409_v60, %v3738_v55  ;;  %v2411_v10 = vpop.eup %2410 }
 0x4e3   :  { %2021 = vperm.xlu0 %2318, %v1823_v41   ;;  %v2413_v62 = vpop.eup %2412  ;;  %2424 = vrcp.f32 %v1976_v56  ;;  %v1974_v22 = vadd.f32 1.0, %v2411_v10 }
 0x4e4   :  { %2012 = vperm.xlu1 %2319, %v1817_v1   ;;  %v2415_v7 = vpop.eup %2414  ;;  %2426 = vrcp.f32 %v1973_v4 }
 0x4e5   :  { %v2417_v5 = vpop.eup %2416  ;;  %2428 = vrcp.f32 %v1974_v22  ;;  %v1975_v40 = vadd.f32 1.0, %v2415_v7 }
 0x4e6   :  { %v2419_v8 = vpop.eup %2418 }
 0x4e7   :  { %2024 = vperm.xlu0 %2318, %v1825_v24   ;;  %v2421_v42 = vpop.eup %2420  ;;  %v1827_v34 = vmul.f32 %v2419_v8, %v3741_v13  ;;  %2430 = vrcp.f32 %v1975_v40 }
 0x4e8   :  { %2082 = vperm.xlu1 %2319, %v2413_v62  }
 0x4e9   :  { %v2423_v55 = vpop.eup %2422 }
 0x4eb   :  { %2079 = vperm.xlu0 %2318, %v2417_v5  }
 0x4ec   :  { %2085 = vperm.xlu1 %2319, %v2421_v42  }
 0x4ed   :  { %v2425_v9 = vpop.eup %2424 }
 0x4ee   :  { %v2427_v51 = vpop.eup %2426 }
 0x4ef   :  { %2027 = vperm.xlu0 %2318, %v1827_v34   ;;  %v2429_v36 = vpop.eup %2428 }
 0x4f0   :  { %2088 = vperm.xlu1 %2319, %v2423_v55  }
 0x4f1   :  { %v2431_v49 = vpop.eup %2430 }
 0x4f3   :  { %2100 = vperm.xlu0 %2318, %v2425_v9  }
 0x4f4   :  { %2091 = vperm.xlu1 %2319, %v2427_v51  }
 0x4f8   :  { %2094 = vperm.xlu1 %2319, %v2429_v36  }
 0x4fc   :  { %2097 = vperm.xlu1 %2319, %v2431_v49  }
 0x500   :  { %1994 = vrot.lane.b32.xlu1 %v1441_v58, %s2450_s11 }
 0x55a   :  { %v2016_v13 = vpop.permute.xlu0 %2015 }
 0x55b   :  { %v2007_v45 = vpop.permute.xlu1 %2006  ;;  %v2045_v3 = vrot.slane %v2016_v13, %v2032_v38 }
 0x55c   :  { %v2033_v59 = vrot.slane %v2007_v45, %v2032_v38 }
 0x55e   :  { %v2019_v18 = vpop.permute.xlu0 %2018 }
 0x55f   :  { %v2010_v12 = vpop.permute.xlu1 %2009  ;;  %v2049_v39 = vrot.slane %v2019_v18, %v2032_v38 }
 0x560   :  { %v2037_v48 = vrot.slane %v2010_v12, %v2032_v38 }
 0x562   :  { %v2022_v26 = vpop.permute.xlu0 %2021  ;;  %v2062_v44 = vsel %vm1612_vm3, %v2037_v48, %v2033_v59 }
 0x563   :  { %v2013_v47 = vpop.permute.xlu1 %2012  ;;  %v2053_v11 = vrot.slane %v2022_v26, %v2032_v38 }
 0x564   :  { %v2041_v46 = vrot.slane %v2013_v47, %v2032_v38 }
 0x566   :  { %v2025_v6 = vpop.permute.xlu0 %2024  ;;  %v2063_v32 = vsel %vm1614_vm4, %v2041_v46, %v2062_v44 }
 0x567   :  { %v2083_v33 = vpop.permute.xlu1 %2082  ;;  %v2064_v17 = vsel %vm1616_vm5, %v2045_v3, %v2063_v32  ;;  %v2057_v37 = vrot.slane %v2025_v6, %v2032_v38 }
 0x568   :  { %v2110_v63 = vrot.slane %v2083_v33, %v2105_v21  ;;  %v2065_v16 = vsel %vm1618_vm6, %v2049_v39, %v2064_v17 }
 0x569   :  { %v2066_v29 = vsel %vm1620_vm8, %v2053_v11, %v2065_v16 }
 0x56a   :  { %v2080_v20 = vpop.permute.xlu0 %2079  ;;  %v2067_v4 = vsel %vm1622_vm2, %v2057_v37, %v2066_v29 }
 0x56b   :  { %v2086_v53 = vpop.permute.xlu1 %2085  ;;  %v2106_v28 = vrot.slane %v2080_v20, %v2105_v21 }
 0x56c   :  { %v2114_v2 = vrot.slane %v2086_v53, %v2105_v21 }
 0x56d   :  { %v2135_v52 = vsel %vm1612_vm3, %v2110_v63, %v2106_v28 }
 0x56e   :  { %v2028_v23 = vpop.permute.xlu0 %2027  ;;  %v2136_v57 = vsel %vm1614_vm4, %v2114_v2, %v2135_v52 }
 0x56f   :  { %v2089_v25 = vpop.permute.xlu1 %2088  ;;  %v2061_v41 = vrot.slane %v2028_v23, %v2032_v38 }
 0x570   :  { %v2118_v19 = vrot.slane %v2089_v25, %v2105_v21 }
 0x571   :  { %v2068_v7 = vsel %vm1624_vm9, %v2061_v41, %v2067_v4 }
 0x572   :  { %v2137_v15 = vsel %vm1616_vm5, %v2118_v19, %v2136_v57  ;;  %v2101_v60 = vpop.permute.xlu0 %2100 }
 0x573   :  { %v2092_v30 = vpop.permute.xlu1 %2091  ;;  %v2134_v10 = vrot.slane %v2101_v60, %v2105_v21 }
 0x574   :  { %v2122_v35 = vrot.slane %v2092_v30, %v2105_v21 }
 0x576   :  { %v2138_v43 = vsel %vm1618_vm6, %v2122_v35, %v2137_v15 }
 0x577   :  { %v2095_v61 = vpop.permute.xlu1 %2094 }
 0x578   :  { %v2126_v54 = vrot.slane %v2095_v61, %v2105_v21 }
 0x57a   :  { %v2139_v56 = vsel %vm1620_vm8, %v2126_v54, %v2138_v43 }
 0x57b   :  { %v2098_v31 = vpop.permute.xlu1 %2097 }
 0x57c   :  { %v2130_v1 = vrot.slane %v2098_v31, %v2105_v21 }
 0x57e   :  { %v2140_v24 = vsel %vm1622_vm2, %v2130_v1, %v2139_v56 }
 0x57f   :  { %v1995_v62 = vpop.permute.xlu1 %1994  ;;  %v2141_v22 = vsel %vm1624_vm9, %v2134_v10, %v2140_v24 }
 0x580   :  { %v2143_v5 = vsel %vm1328_vm1, %v3774_v27, %v1995_v62 }
 0x581   :  { %v2145_v8 = vsel %vm2144_vm0, %v2143_v5, %v2068_v7 }
 0x582   :  { %v2147_v42 = vsel %vm2146_vm14, %v2145_v8, %v2141_v22 }
 0x583   :  { %2148 = vst [vmem:[%s3875_s16] sm:$0xff] %v2147_v42 }

</bundles_post_ra>
